<compile_context>
chip_gen: v7x
topology: tpu7x:2x2x1
jax: 0.10.0
libtpu: 0.0.40
codegen_flags: <defaults>
</compile_context>

<pallas_src>
import jax
import jax.numpy as jnp
from jax.experimental import pallas as pl
from jax.experimental.pallas import tpu as pltpu

# ----------------------------- model dims ----------------------------------
N, C_IN, H, W = 2, 4, 16, 16          # input (NCHW)
C_OUT = 8                             # conv output channels
KH = KW = 3                           # conv kernel (3x3, stride 1, pad 1)
EMB = 32                              # embedding dim
HW = H * W                            # 256 spatial positions (lane axis)
KFEAT = KH * KW * C_IN                # 36 (tap, ci) weight columns

assert W & (W - 1) == 0 and H & (H - 1) == 0, "in-kernel coord math assumes pow2 H, W"
_W_SHIFT = W.bit_length() - 1


# ----------------------------- fused Pallas kernel --------------------------
def facenet_fused_kernel(x_ref, wc_ref, bc_ref, wf_ref, bf_ref, out_ref):
    # x_ref:  (N*C_IN, HW) = (8, 256)   NCHW reshaped; lanes = spatial
    # wc_ref: (C_OUT, KFEAT) = (8, 36)  column (dh*KW+dw)*C_IN+ci = w[co, ci, dh, dw]
    # bc_ref: (C_OUT, 1)                conv bias (per-sublane)
    # wf_ref: (C_OUT, EMB) = (8, 32)    FC weight, pre-scaled by 1/HW (pool fold)
    # bf_ref: (1, EMB)
    # out_ref:(N, EMB) = (2, 32)
    x = x_ref[...]                                            # (8, 256), lane-dense

    # Static spatial coordinates of every lane (computed once).
    pos = jax.lax.broadcasted_iota(jnp.int32, (N * C_IN, HW), 1)
    col = pos & (W - 1)
    row = pos >> _W_SHIFT

    acc = [jnp.zeros((C_OUT, HW), jnp.float32) for _ in range(N)]  # 2 x (8,256)

    for dh in range(KH):
        for dw in range(KW):
            oh, ow = dh - 1, dw - 1
            shift = oh * W + ow
            # Tap shift as a lane rotation (XLU); wrap-around lanes are masked out.
            xs = x if shift == 0 else pltpu.roll(x, shift=(-shift) % HW, axis=1)
            conds = []
            if oh < 0:
                conds.append(row >= -oh)
            if oh > 0:
                conds.append(row < H - oh)
            if ow < 0:
                conds.append(col >= -ow)
            if ow > 0:
                conds.append(col < W - ow)
            if conds:
                m = conds[0]
                for extra in conds[1:]:
                    m = m & extra
                xt = jnp.where(m, xs, 0.0)                    # zero 'same' padding taps
            else:
                xt = xs

            tap = dh * KW + dw
            for ci in range(C_IN):
                idx = tap * C_IN + ci
                # Per-output-channel weight column, broadcast along lanes (hoisted).
                wb = jnp.broadcast_to(wc_ref[:, idx:idx + 1], (C_OUT, HW))
                for n in range(N):
                    r = n * C_IN + ci
                    xb = jnp.broadcast_to(xt[r:r + 1, :], (C_OUT, HW))
                    acc[n] = acc[n] + wb * xb                 # VPU FMA on dense vregs

    bc = bc_ref[...]                                          # (8, 1)
    wf = wf_ref[...]                                          # (8, 32), 1/HW folded in
    bf = bf_ref[...]                                          # (1, 32)

    rows = []
    for n in range(N):
        act = jnp.maximum(acc[n] + bc, 0.0)                   # conv bias + ReLU
        pooled = jnp.sum(act, axis=1, keepdims=True)          # (8,1) lane-axis reduce
        emb = jnp.sum(pooled * wf, axis=0, keepdims=True) + bf  # (1,32) FC on VPU/XLU
        # F.normalize(emb, p=2, dim=1, eps=1e-12) == emb * rsqrt(max(|emb|^2, eps^2))
        ssq = jnp.sum(emb * emb, axis=1, keepdims=True)
        inv = jax.lax.rsqrt(jnp.maximum(ssq, 1e-24))          # EUP slot
        rows.append(emb * inv)

    out_ref[...] = jnp.concatenate(rows, axis=0)              # (2, 32)


# ----------------------------- wrapper ---------------------------------------
def _full_spec(shape):
    return pl.BlockSpec(shape, lambda i: (0,) * len(shape))


@jax.jit
def wrapped_distortion_facenet(x_nchw, w_conv, b_conv, w_fc, b_fc):
    # NCHW is already spatial-minor: this reshape is free (no transpose/pad chain).
    x_k = x_nchw.reshape(N * C_IN, HW)                                  # (8, 256)
    # Tiny one-time weight re-layouts (would be folded at model-load time).
    wc_k = jnp.transpose(w_conv, (0, 2, 3, 1)).reshape(C_OUT, KFEAT)    # (8, 36)
    bc_k = b_conv.reshape(C_OUT, 1)                                     # (8, 1)
    wf_k = w_fc * (1.0 / HW)                                            # fold mean-pool scale
    bf_k = b_fc.reshape(1, EMB)                                         # (1, 32)

    return pl.pallas_call(
        facenet_fused_kernel,
        grid=(1,),
        in_specs=[_full_spec((N * C_IN, HW)),
                  _full_spec((C_OUT, KFEAT)),
                  _full_spec((C_OUT, 1)),
                  _full_spec((C_OUT, EMB)),
                  _full_spec((1, EMB))],
        out_specs=_full_spec((N, EMB)),
        out_shape=jax.ShapeDtypeStruct((N, EMB), jnp.float32),
        compiler_params=pltpu.CompilerParams(
            dimension_semantics=("arbitrary",)),
    )(x_k, wc_k, bc_k, wf_k, bf_k)


# ----------------------------- reference (pure JAX) --------------------------
def reference(x_nchw, w_conv, b_conv, w_fc, b_fc):
    conv = jax.lax.conv_general_dilated(
        x_nchw, w_conv, window_strides=(1, 1), padding="SAME",
        dimension_numbers=("NCHW", "OIHW", "NCHW"))
    act = jnp.maximum(conv + b_conv[None, :, None, None], 0.0)
    pooled = act.mean(axis=(2, 3))                                   # (N, C_OUT)
    emb = pooled @ w_fc + b_fc[None, :]                              # (N, EMB)
    norm = jnp.sqrt(jnp.sum(emb * emb, axis=1, keepdims=True))
    return emb / jnp.maximum(norm, 1e-12)


# ----------------------------- main ------------------------------------------
if __name__ == "__main__":
    key = jax.random.PRNGKey(0)
    k_x, k_wc, k_bc, k_wf, k_bf = jax.random.split(key, 5)

    x = jax.random.normal(k_x, (N, C_IN, H, W), dtype=jnp.float32)

    # Deterministic synthetic backbone parameters (PyTorch layouts: OIHW etc.).
    w_conv = jax.random.normal(k_wc, (C_OUT, C_IN, KH, KW), jnp.float32) * 0.1
    b_conv = jax.random.normal(k_bc, (C_OUT,), jnp.float32) * 0.1
    w_fc = jax.random.normal(k_wf, (C_OUT, EMB), jnp.float32) * 0.1
    b_fc = jax.random.normal(k_bf, (EMB,), jnp.float32) * 0.1

    out = wrapped_distortion_facenet(x, w_conv, b_conv, w_fc, b_fc)
    out = jax.block_until_ready(out)

    ref = reference(x, w_conv, b_conv, w_fc, b_fc)
    assert out.shape == (N, EMB)
    assert jnp.allclose(out, ref, rtol=1e-3, atol=1e-3), "mismatch vs reference"
    assert jnp.allclose(jnp.linalg.norm(out, axis=1), 1.0, atol=1e-4)

    print("KERNEL_OK")
</pallas_src>

<mosaic_0001>
module attributes {stable_mosaic.version = 11 : i64} {
  func.func @facenet_fused_kernel(%arg0: i32, %arg1: memref<8x256xf32, #tpu.memory_space<vmem>>, %arg2: memref<8x36xf32, #tpu.memory_space<vmem>>, %arg3: memref<8x1xf32, #tpu.memory_space<vmem>>, %arg4: memref<8x32xf32, #tpu.memory_space<vmem>>, %arg5: memref<1x32xf32, #tpu.memory_space<vmem>>, %arg6: memref<2x32xf32, #tpu.memory_space<vmem>>) attributes {dimension_semantics = [#tpu.dimension_semantics<arbitrary>], iteration_bounds = array<i64: 1>, scalar_prefetch = 0 : i64, scratch_operands = 0 : i64, tpu.core_type = #tpu.core_type<tc>, window_params = [{pipeline_mode = #tpu.pipeline_mode<synchronous>, transform_indices = @transform_0, window_bounds = array<i64: 8, 256>}, {pipeline_mode = #tpu.pipeline_mode<synchronous>, transform_indices = @transform_1, window_bounds = array<i64: 8, 36>}, {pipeline_mode = #tpu.pipeline_mode<synchronous>, transform_indices = @transform_2, window_bounds = array<i64: 8, 1>}, {pipeline_mode = #tpu.pipeline_mode<synchronous>, transform_indices = @transform_3, window_bounds = array<i64: 8, 32>}, {pipeline_mode = #tpu.pipeline_mode<synchronous>, transform_indices = @transform_4, window_bounds = array<i64: 1, 32>}, {pipeline_mode = #tpu.pipeline_mode<synchronous>, transform_indices = @transform_5, window_bounds = array<i64: 2, 32>}]} {
    %c0 = arith.constant 0 : index
    %c0_0 = arith.constant 0 : index
    %0 = vector.load %arg1[%c0, %c0_0] : memref<8x256xf32, #tpu.memory_space<vmem>>, vector<8x256xf32>
    %1 = tpu.iota {dimensions = array<i32: 1>} : vector<8x256xi32>
    %c15_i32 = arith.constant 15 : i32
    %2 = vector.broadcast %c15_i32 : i32 to vector<8x256xi32>
    %3 = arith.andi %1, %2 : vector<8x256xi32>
    %c4_i32 = arith.constant 4 : i32
    %4 = vector.broadcast %c4_i32 : i32 to vector<8x256xi32>
    %5 = arith.shrsi %1, %4 : vector<8x256xi32>
    %cst = arith.constant 0.000000e+00 : f32
    %6 = vector.broadcast %cst : f32 to vector<8x256xf32>
    %cst_1 = arith.constant 0.000000e+00 : f32
    %7 = vector.broadcast %cst_1 : f32 to vector<8x256xf32>
    %c17_i32 = arith.constant 17 : i32
    %8 = tpu.dynamic_rotate %0 by %c17_i32 dim 1 : vector<8x256xf32>, i32 -> vector<8x256xf32>
    %c1_i32 = arith.constant 1 : i32
    %9 = vector.broadcast %c1_i32 : i32 to vector<8x256xi32>
    %10 = arith.cmpi sge, %5, %9 : vector<8x256xi32>
    %c1_i32_2 = arith.constant 1 : i32
    %11 = vector.broadcast %c1_i32_2 : i32 to vector<8x256xi32>
    %12 = arith.cmpi sge, %3, %11 : vector<8x256xi32>
    %13 = arith.andi %10, %12 : vector<8x256xi1>
    %cst_3 = arith.constant 0.000000e+00 : f32
    %14 = vector.broadcast %cst_3 : f32 to vector<8x256xf32>
    %15 = arith.select %13, %8, %14 : vector<8x256xi1>, vector<8x256xf32>
    %c0_4 = arith.constant 0 : index
    %c0_5 = arith.constant 0 : index
    %16 = vector.load %arg2[%c0_4, %c0_5] : memref<8x36xf32, #tpu.memory_space<vmem>>, vector<8x1xf32>
    %17 = vector.shape_cast %16 : vector<8x1xf32> to vector<8x1xf32>
    %18 = vector.broadcast %17 : vector<8x1xf32> to vector<8x256xf32>
    %19 = vector.extract_strided_slice %15 {offsets = [0, 0], sizes = [1, 256], strides = [1, 1]} : vector<8x256xf32> to vector<1x256xf32>
    %20 = vector.shape_cast %19 : vector<1x256xf32> to vector<1x256xf32>
    %21 = vector.broadcast %20 : vector<1x256xf32> to vector<8x256xf32>
    %22 = arith.mulf %18, %21 : vector<8x256xf32>
    %23 = arith.addf %6, %22 : vector<8x256xf32>
    %24 = vector.extract_strided_slice %15 {offsets = [4, 0], sizes = [1, 256], strides = [1, 1]} : vector<8x256xf32> to vector<1x256xf32>
    %25 = vector.shape_cast %24 : vector<1x256xf32> to vector<1x256xf32>
    %26 = vector.broadcast %25 : vector<1x256xf32> to vector<8x256xf32>
    %27 = arith.mulf %18, %26 : vector<8x256xf32>
    %28 = arith.addf %7, %27 : vector<8x256xf32>
    %c0_6 = arith.constant 0 : index
    %c1 = arith.constant 1 : index
    %29 = vector.load %arg2[%c0_6, %c1] : memref<8x36xf32, #tpu.memory_space<vmem>>, vector<8x1xf32>
    %30 = vector.shape_cast %29 : vector<8x1xf32> to vector<8x1xf32>
    %31 = vector.broadcast %30 : vector<8x1xf32> to vector<8x256xf32>
    %32 = vector.extract_strided_slice %15 {offsets = [1, 0], sizes = [1, 256], strides = [1, 1]} : vector<8x256xf32> to vector<1x256xf32>
    %33 = vector.shape_cast %32 : vector<1x256xf32> to vector<1x256xf32>
    %34 = vector.broadcast %33 : vector<1x256xf32> to vector<8x256xf32>
    %35 = arith.mulf %31, %34 : vector<8x256xf32>
    %36 = arith.addf %23, %35 : vector<8x256xf32>
    %37 = vector.extract_strided_slice %15 {offsets = [5, 0], sizes = [1, 256], strides = [1, 1]} : vector<8x256xf32> to vector<1x256xf32>
    %38 = vector.shape_cast %37 : vector<1x256xf32> to vector<1x256xf32>
    %39 = vector.broadcast %38 : vector<1x256xf32> to vector<8x256xf32>
    %40 = arith.mulf %31, %39 : vector<8x256xf32>
    %41 = arith.addf %28, %40 : vector<8x256xf32>
    %c0_7 = arith.constant 0 : index
    %c2 = arith.constant 2 : index
    %42 = vector.load %arg2[%c0_7, %c2] : memref<8x36xf32, #tpu.memory_space<vmem>>, vector<8x1xf32>
    %43 = vector.shape_cast %42 : vector<8x1xf32> to vector<8x1xf32>
    %44 = vector.broadcast %43 : vector<8x1xf32> to vector<8x256xf32>
    %45 = vector.extract_strided_slice %15 {offsets = [2, 0], sizes = [1, 256], strides = [1, 1]} : vector<8x256xf32> to vector<1x256xf32>
    %46 = vector.shape_cast %45 : vector<1x256xf32> to vector<1x256xf32>
    %47 = vector.broadcast %46 : vector<1x256xf32> to vector<8x256xf32>
    %48 = arith.mulf %44, %47 : vector<8x256xf32>
    %49 = arith.addf %36, %48 : vector<8x256xf32>
    %50 = vector.extract_strided_slice %15 {offsets = [6, 0], sizes = [1, 256], strides = [1, 1]} : vector<8x256xf32> to vector<1x256xf32>
    %51 = vector.shape_cast %50 : vector<1x256xf32> to vector<1x256xf32>
    %52 = vector.broadcast %51 : vector<1x256xf32> to vector<8x256xf32>
    %53 = arith.mulf %44, %52 : vector<8x256xf32>
    %54 = arith.addf %41, %53 : vector<8x256xf32>
    %c0_8 = arith.constant 0 : index
    %c3 = arith.constant 3 : index
    %55 = vector.load %arg2[%c0_8, %c3] : memref<8x36xf32, #tpu.memory_space<vmem>>, vector<8x1xf32>
    %56 = vector.shape_cast %55 : vector<8x1xf32> to vector<8x1xf32>
    %57 = vector.broadcast %56 : vector<8x1xf32> to vector<8x256xf32>
    %58 = vector.extract_strided_slice %15 {offsets = [3, 0], sizes = [1, 256], strides = [1, 1]} : vector<8x256xf32> to vector<1x256xf32>
    %59 = vector.shape_cast %58 : vector<1x256xf32> to vector<1x256xf32>
    %60 = vector.broadcast %59 : vector<1x256xf32> to vector<8x256xf32>
    %61 = arith.mulf %57, %60 : vector<8x256xf32>
    %62 = arith.addf %49, %61 : vector<8x256xf32>
    %63 = vector.extract_strided_slice %15 {offsets = [7, 0], sizes = [1, 256], strides = [1, 1]} : vector<8x256xf32> to vector<1x256xf32>
    %64 = vector.shape_cast %63 : vector<1x256xf32> to vector<1x256xf32>
    %65 = vector.broadcast %64 : vector<1x256xf32> to vector<8x256xf32>
    %66 = arith.mulf %57, %65 : vector<8x256xf32>
    %67 = arith.addf %54, %66 : vector<8x256xf32>
    %c16_i32 = arith.constant 16 : i32
    %68 = tpu.dynamic_rotate %0 by %c16_i32 dim 1 : vector<8x256xf32>, i32 -> vector<8x256xf32>
    %c1_i32_9 = arith.constant 1 : i32
    %69 = vector.broadcast %c1_i32_9 : i32 to vector<8x256xi32>
    %70 = arith.cmpi sge, %5, %69 : vector<8x256xi32>
    %cst_10 = arith.constant 0.000000e+00 : f32
    %71 = vector.broadcast %cst_10 : f32 to vector<8x256xf32>
    %72 = arith.select %70, %68, %71 : vector<8x256xi1>, vector<8x256xf32>
    %c0_11 = arith.constant 0 : index
    %c4 = arith.constant 4 : index
    %73 = vector.load %arg2[%c0_11, %c4] : memref<8x36xf32, #tpu.memory_space<vmem>>, vector<8x1xf32>
    %74 = vector.shape_cast %73 : vector<8x1xf32> to vector<8x1xf32>
    %75 = vector.broadcast %74 : vector<8x1xf32> to vector<8x256xf32>
    %76 = vector.extract_strided_slice %72 {offsets = [0, 0], sizes = [1, 256], strides = [1, 1]} : vector<8x256xf32> to vector<1x256xf32>
    %77 = vector.shape_cast %76 : vector<1x256xf32> to vector<1x256xf32>
    %78 = vector.broadcast %77 : vector<1x256xf32> to vector<8x256xf32>
    %79 = arith.mulf %75, %78 : vector<8x256xf32>
    %80 = arith.addf %62, %79 : vector<8x256xf32>
    %81 = vector.extract_strided_slice %72 {offsets = [4, 0], sizes = [1, 256], strides = [1, 1]} : vector<8x256xf32> to vector<1x256xf32>
    %82 = vector.shape_cast %81 : vector<1x256xf32> to vector<1x256xf32>
    %83 = vector.broadcast %82 : vector<1x256xf32> to vector<8x256xf32>
    %84 = arith.mulf %75, %83 : vector<8x256xf32>
    %85 = arith.addf %67, %84 : vector<8x256xf32>
    %c0_12 = arith.constant 0 : index
    %c5 = arith.constant 5 : index
    %86 = vector.load %arg2[%c0_12, %c5] : memref<8x36xf32, #tpu.memory_space<vmem>>, vector<8x1xf32>
    %87 = vector.shape_cast %86 : vector<8x1xf32> to vector<8x1xf32>
    %88 = vector.broadcast %87 : vector<8x1xf32> to vector<8x256xf32>
    %89 = vector.extract_strided_slice %72 {offsets = [1, 0], sizes = [1, 256], strides = [1, 1]} : vector<8x256xf32> to vector<1x256xf32>
    %90 = vector.shape_cast %89 : vector<1x256xf32> to vector<1x256xf32>
    %91 = vector.broadcast %90 : vector<1x256xf32> to vector<8x256xf32>
    %92 = arith.mulf %88, %91 : vector<8x256xf32>
    %93 = arith.addf %80, %92 : vector<8x256xf32>
    %94 = vector.extract_strided_slice %72 {offsets = [5, 0], sizes = [1, 256], strides = [1, 1]} : vector<8x256xf32> to vector<1x256xf32>
    %95 = vector.shape_cast %94 : vector<1x256xf32> to vector<1x256xf32>
    %96 = vector.broadcast %95 : vector<1x256xf32> to vector<8x256xf32>
    %97 = arith.mulf %88, %96 : vector<8x256xf32>
    %98 = arith.addf %85, %97 : vector<8x256xf32>
    %c0_13 = arith.constant 0 : index
    %c6 = arith.constant 6 : index
    %99 = vector.load %arg2[%c0_13, %c6] : memref<8x36xf32, #tpu.memory_space<vmem>>, vector<8x1xf32>
    %100 = vector.shape_cast %99 : vector<8x1xf32> to vector<8x1xf32>
    %101 = vector.broadcast %100 : vector<8x1xf32> to vector<8x256xf32>
    %102 = vector.extract_strided_slice %72 {offsets = [2, 0], sizes = [1, 256], strides = [1, 1]} : vector<8x256xf32> to vector<1x256xf32>
    %103 = vector.shape_cast %102 : vector<1x256xf32> to vector<1x256xf32>
    %104 = vector.broadcast %103 : vector<1x256xf32> to vector<8x256xf32>
    %105 = arith.mulf %101, %104 : vector<8x256xf32>
    %106 = arith.addf %93, %105 : vector<8x256xf32>
    %107 = vector.extract_strided_slice %72 {offsets = [6, 0], sizes = [1, 256], strides = [1, 1]} : vector<8x256xf32> to vector<1x256xf32>
    %108 = vector.shape_cast %107 : vector<1x256xf32> to vector<1x256xf32>
    %109 = vector.broadcast %108 : vector<1x256xf32> to vector<8x256xf32>
    %110 = arith.mulf %101, %109 : vector<8x256xf32>
    %111 = arith.addf %98, %110 : vector<8x256xf32>
    %c0_14 = arith.constant 0 : index
    %c7 = arith.constant 7 : index
    %112 = vector.load %arg2[%c0_14, %c7] : memref<8x36xf32, #tpu.memory_space<vmem>>, vector<8x1xf32>
    %113 = vector.shape_cast %112 : vector<8x1xf32> to vector<8x1xf32>
    %114 = vector.broadcast %113 : vector<8x1xf32> to vector<8x256xf32>
    %115 = vector.extract_strided_slice %72 {offsets = [3, 0], sizes = [1, 256], strides = [1, 1]} : vector<8x256xf32> to vector<1x256xf32>
    %116 = vector.shape_cast %115 : vector<1x256xf32> to vector<1x256xf32>
    %117 = vector.broadcast %116 : vector<1x256xf32> to vector<8x256xf32>
    %118 = arith.mulf %114, %117 : vector<8x256xf32>
    %119 = arith.addf %106, %118 : vector<8x256xf32>
    %120 = vector.extract_strided_slice %72 {offsets = [7, 0], sizes = [1, 256], strides = [1, 1]} : vector<8x256xf32> to vector<1x256xf32>
    %121 = vector.shape_cast %120 : vector<1x256xf32> to vector<1x256xf32>
    %122 = vector.broadcast %121 : vector<1x256xf32> to vector<8x256xf32>
    %123 = arith.mulf %114, %122 : vector<8x256xf32>
    %124 = arith.addf %111, %123 : vector<8x256xf32>
    %c15_i32_15 = arith.constant 15 : i32
    %125 = tpu.dynamic_rotate %0 by %c15_i32_15 dim 1 : vector<8x256xf32>, i32 -> vector<8x256xf32>
    %c1_i32_16 = arith.constant 1 : i32
    %126 = vector.broadcast %c1_i32_16 : i32 to vector<8x256xi32>
    %127 = arith.cmpi sge, %5, %126 : vector<8x256xi32>
    %c15_i32_17 = arith.constant 15 : i32
    %128 = vector.broadcast %c15_i32_17 : i32 to vector<8x256xi32>
    %129 = arith.cmpi slt, %3, %128 : vector<8x256xi32>
    %130 = arith.andi %127, %129 : vector<8x256xi1>
    %cst_18 = arith.constant 0.000000e+00 : f32
    %131 = vector.broadcast %cst_18 : f32 to vector<8x256xf32>
    %132 = arith.select %130, %125, %131 : vector<8x256xi1>, vector<8x256xf32>
    %c0_19 = arith.constant 0 : index
    %c8 = arith.constant 8 : index
    %133 = vector.load %arg2[%c0_19, %c8] : memref<8x36xf32, #tpu.memory_space<vmem>>, vector<8x1xf32>
    %134 = vector.shape_cast %133 : vector<8x1xf32> to vector<8x1xf32>
    %135 = vector.broadcast %134 : vector<8x1xf32> to vector<8x256xf32>
    %136 = vector.extract_strided_slice %132 {offsets = [0, 0], sizes = [1, 256], strides = [1, 1]} : vector<8x256xf32> to vector<1x256xf32>
    %137 = vector.shape_cast %136 : vector<1x256xf32> to vector<1x256xf32>
    %138 = vector.broadcast %137 : vector<1x256xf32> to vector<8x256xf32>
    %139 = arith.mulf %135, %138 : vector<8x256xf32>
    %140 = arith.addf %119, %139 : vector<8x256xf32>
    %141 = vector.extract_strided_slice %132 {offsets = [4, 0], sizes = [1, 256], strides = [1, 1]} : vector<8x256xf32> to vector<1x256xf32>
    %142 = vector.shape_cast %141 : vector<1x256xf32> to vector<1x256xf32>
    %143 = vector.broadcast %142 : vector<1x256xf32> to vector<8x256xf32>
    %144 = arith.mulf %135, %143 : vector<8x256xf32>
    %145 = arith.addf %124, %144 : vector<8x256xf32>
    %c0_20 = arith.constant 0 : index
    %c9 = arith.constant 9 : index
    %146 = vector.load %arg2[%c0_20, %c9] : memref<8x36xf32, #tpu.memory_space<vmem>>, vector<8x1xf32>
    %147 = vector.shape_cast %146 : vector<8x1xf32> to vector<8x1xf32>
    %148 = vector.broadcast %147 : vector<8x1xf32> to vector<8x256xf32>
    %149 = vector.extract_strided_slice %132 {offsets = [1, 0], sizes = [1, 256], strides = [1, 1]} : vector<8x256xf32> to vector<1x256xf32>
    %150 = vector.shape_cast %149 : vector<1x256xf32> to vector<1x256xf32>
    %151 = vector.broadcast %150 : vector<1x256xf32> to vector<8x256xf32>
    %152 = arith.mulf %148, %151 : vector<8x256xf32>
    %153 = arith.addf %140, %152 : vector<8x256xf32>
    %154 = vector.extract_strided_slice %132 {offsets = [5, 0], sizes = [1, 256], strides = [1, 1]} : vector<8x256xf32> to vector<1x256xf32>
    %155 = vector.shape_cast %154 : vector<1x256xf32> to vector<1x256xf32>
    %156 = vector.broadcast %155 : vector<1x256xf32> to vector<8x256xf32>
    %157 = arith.mulf %148, %156 : vector<8x256xf32>
    %158 = arith.addf %145, %157 : vector<8x256xf32>
    %c0_21 = arith.constant 0 : index
    %c10 = arith.constant 10 : index
    %159 = vector.load %arg2[%c0_21, %c10] : memref<8x36xf32, #tpu.memory_space<vmem>>, vector<8x1xf32>
    %160 = vector.shape_cast %159 : vector<8x1xf32> to vector<8x1xf32>
    %161 = vector.broadcast %160 : vector<8x1xf32> to vector<8x256xf32>
    %162 = vector.extract_strided_slice %132 {offsets = [2, 0], sizes = [1, 256], strides = [1, 1]} : vector<8x256xf32> to vector<1x256xf32>
    %163 = vector.shape_cast %162 : vector<1x256xf32> to vector<1x256xf32>
    %164 = vector.broadcast %163 : vector<1x256xf32> to vector<8x256xf32>
    %165 = arith.mulf %161, %164 : vector<8x256xf32>
    %166 = arith.addf %153, %165 : vector<8x256xf32>
    %167 = vector.extract_strided_slice %132 {offsets = [6, 0], sizes = [1, 256], strides = [1, 1]} : vector<8x256xf32> to vector<1x256xf32>
    %168 = vector.shape_cast %167 : vector<1x256xf32> to vector<1x256xf32>
    %169 = vector.broadcast %168 : vector<1x256xf32> to vector<8x256xf32>
    %170 = arith.mulf %161, %169 : vector<8x256xf32>
    %171 = arith.addf %158, %170 : vector<8x256xf32>
    %c0_22 = arith.constant 0 : index
    %c11 = arith.constant 11 : index
    %172 = vector.load %arg2[%c0_22, %c11] : memref<8x36xf32, #tpu.memory_space<vmem>>, vector<8x1xf32>
    %173 = vector.shape_cast %172 : vector<8x1xf32> to vector<8x1xf32>
    %174 = vector.broadcast %173 : vector<8x1xf32> to vector<8x256xf32>
    %175 = vector.extract_strided_slice %132 {offsets = [3, 0], sizes = [1, 256], strides = [1, 1]} : vector<8x256xf32> to vector<1x256xf32>
    %176 = vector.shape_cast %175 : vector<1x256xf32> to vector<1x256xf32>
    %177 = vector.broadcast %176 : vector<1x256xf32> to vector<8x256xf32>
    %178 = arith.mulf %174, %177 : vector<8x256xf32>
    %179 = arith.addf %166, %178 : vector<8x256xf32>
    %180 = vector.extract_strided_slice %132 {offsets = [7, 0], sizes = [1, 256], strides = [1, 1]} : vector<8x256xf32> to vector<1x256xf32>
    %181 = vector.shape_cast %180 : vector<1x256xf32> to vector<1x256xf32>
    %182 = vector.broadcast %181 : vector<1x256xf32> to vector<8x256xf32>
    %183 = arith.mulf %174, %182 : vector<8x256xf32>
    %184 = arith.addf %171, %183 : vector<8x256xf32>
    %c1_i32_23 = arith.constant 1 : i32
    %185 = tpu.dynamic_rotate %0 by %c1_i32_23 dim 1 : vector<8x256xf32>, i32 -> vector<8x256xf32>
    %c1_i32_24 = arith.constant 1 : i32
    %186 = vector.broadcast %c1_i32_24 : i32 to vector<8x256xi32>
    %187 = arith.cmpi sge, %3, %186 : vector<8x256xi32>
    %cst_25 = arith.constant 0.000000e+00 : f32
    %188 = vector.broadcast %cst_25 : f32 to vector<8x256xf32>
    %189 = arith.select %187, %185, %188 : vector<8x256xi1>, vector<8x256xf32>
    %c0_26 = arith.constant 0 : index
    %c12 = arith.constant 12 : index
    %190 = vector.load %arg2[%c0_26, %c12] : memref<8x36xf32, #tpu.memory_space<vmem>>, vector<8x1xf32>
    %191 = vector.shape_cast %190 : vector<8x1xf32> to vector<8x1xf32>
    %192 = vector.broadcast %191 : vector<8x1xf32> to vector<8x256xf32>
    %193 = vector.extract_strided_slice %189 {offsets = [0, 0], sizes = [1, 256], strides = [1, 1]} : vector<8x256xf32> to vector<1x256xf32>
    %194 = vector.shape_cast %193 : vector<1x256xf32> to vector<1x256xf32>
    %195 = vector.broadcast %194 : vector<1x256xf32> to vector<8x256xf32>
    %196 = arith.mulf %192, %195 : vector<8x256xf32>
    %197 = arith.addf %179, %196 : vector<8x256xf32>
    %198 = vector.extract_strided_slice %189 {offsets = [4, 0], sizes = [1, 256], strides = [1, 1]} : vector<8x256xf32> to vector<1x256xf32>
    %199 = vector.shape_cast %198 : vector<1x256xf32> to vector<1x256xf32>
    %200 = vector.broadcast %199 : vector<1x256xf32> to vector<8x256xf32>
    %201 = arith.mulf %192, %200 : vector<8x256xf32>
    %202 = arith.addf %184, %201 : vector<8x256xf32>
    %c0_27 = arith.constant 0 : index
    %c13 = arith.constant 13 : index
    %203 = vector.load %arg2[%c0_27, %c13] : memref<8x36xf32, #tpu.memory_space<vmem>>, vector<8x1xf32>
    %204 = vector.shape_cast %203 : vector<8x1xf32> to vector<8x1xf32>
    %205 = vector.broadcast %204 : vector<8x1xf32> to vector<8x256xf32>
    %206 = vector.extract_strided_slice %189 {offsets = [1, 0], sizes = [1, 256], strides = [1, 1]} : vector<8x256xf32> to vector<1x256xf32>
    %207 = vector.shape_cast %206 : vector<1x256xf32> to vector<1x256xf32>
    %208 = vector.broadcast %207 : vector<1x256xf32> to vector<8x256xf32>
    %209 = arith.mulf %205, %208 : vector<8x256xf32>
    %210 = arith.addf %197, %209 : vector<8x256xf32>
    %211 = vector.extract_strided_slice %189 {offsets = [5, 0], sizes = [1, 256], strides = [1, 1]} : vector<8x256xf32> to vector<1x256xf32>
    %212 = vector.shape_cast %211 : vector<1x256xf32> to vector<1x256xf32>
    %213 = vector.broadcast %212 : vector<1x256xf32> to vector<8x256xf32>
    %214 = arith.mulf %205, %213 : vector<8x256xf32>
    %215 = arith.addf %202, %214 : vector<8x256xf32>
    %c0_28 = arith.constant 0 : index
    %c14 = arith.constant 14 : index
    %216 = vector.load %arg2[%c0_28, %c14] : memref<8x36xf32, #tpu.memory_space<vmem>>, vector<8x1xf32>
    %217 = vector.shape_cast %216 : vector<8x1xf32> to vector<8x1xf32>
    %218 = vector.broadcast %217 : vector<8x1xf32> to vector<8x256xf32>
    %219 = vector.extract_strided_slice %189 {offsets = [2, 0], sizes = [1, 256], strides = [1, 1]} : vector<8x256xf32> to vector<1x256xf32>
    %220 = vector.shape_cast %219 : vector<1x256xf32> to vector<1x256xf32>
    %221 = vector.broadcast %220 : vector<1x256xf32> to vector<8x256xf32>
    %222 = arith.mulf %218, %221 : vector<8x256xf32>
    %223 = arith.addf %210, %222 : vector<8x256xf32>
    %224 = vector.extract_strided_slice %189 {offsets = [6, 0], sizes = [1, 256], strides = [1, 1]} : vector<8x256xf32> to vector<1x256xf32>
    %225 = vector.shape_cast %224 : vector<1x256xf32> to vector<1x256xf32>
    %226 = vector.broadcast %225 : vector<1x256xf32> to vector<8x256xf32>
    %227 = arith.mulf %218, %226 : vector<8x256xf32>
    %228 = arith.addf %215, %227 : vector<8x256xf32>
    %c0_29 = arith.constant 0 : index
    %c15 = arith.constant 15 : index
    %229 = vector.load %arg2[%c0_29, %c15] : memref<8x36xf32, #tpu.memory_space<vmem>>, vector<8x1xf32>
    %230 = vector.shape_cast %229 : vector<8x1xf32> to vector<8x1xf32>
    %231 = vector.broadcast %230 : vector<8x1xf32> to vector<8x256xf32>
    %232 = vector.extract_strided_slice %189 {offsets = [3, 0], sizes = [1, 256], strides = [1, 1]} : vector<8x256xf32> to vector<1x256xf32>
    %233 = vector.shape_cast %232 : vector<1x256xf32> to vector<1x256xf32>
    %234 = vector.broadcast %233 : vector<1x256xf32> to vector<8x256xf32>
    %235 = arith.mulf %231, %234 : vector<8x256xf32>
    %236 = arith.addf %223, %235 : vector<8x256xf32>
    %237 = vector.extract_strided_slice %189 {offsets = [7, 0], sizes = [1, 256], strides = [1, 1]} : vector<8x256xf32> to vector<1x256xf32>
    %238 = vector.shape_cast %237 : vector<1x256xf32> to vector<1x256xf32>
    %239 = vector.broadcast %238 : vector<1x256xf32> to vector<8x256xf32>
    %240 = arith.mulf %231, %239 : vector<8x256xf32>
    %241 = arith.addf %228, %240 : vector<8x256xf32>
    %c0_30 = arith.constant 0 : index
    %c16 = arith.constant 16 : index
    %242 = vector.load %arg2[%c0_30, %c16] : memref<8x36xf32, #tpu.memory_space<vmem>>, vector<8x1xf32>
    %243 = vector.shape_cast %242 : vector<8x1xf32> to vector<8x1xf32>
    %244 = vector.broadcast %243 : vector<8x1xf32> to vector<8x256xf32>
    %245 = vector.extract_strided_slice %0 {offsets = [0, 0], sizes = [1, 256], strides = [1, 1]} : vector<8x256xf32> to vector<1x256xf32>
    %246 = vector.shape_cast %245 : vector<1x256xf32> to vector<1x256xf32>
    %247 = vector.broadcast %246 : vector<1x256xf32> to vector<8x256xf32>
    %248 = arith.mulf %244, %247 : vector<8x256xf32>
    %249 = arith.addf %236, %248 : vector<8x256xf32>
    %250 = vector.extract_strided_slice %0 {offsets = [4, 0], sizes = [1, 256], strides = [1, 1]} : vector<8x256xf32> to vector<1x256xf32>
    %251 = vector.shape_cast %250 : vector<1x256xf32> to vector<1x256xf32>
    %252 = vector.broadcast %251 : vector<1x256xf32> to vector<8x256xf32>
    %253 = arith.mulf %244, %252 : vector<8x256xf32>
    %254 = arith.addf %241, %253 : vector<8x256xf32>
    %c0_31 = arith.constant 0 : index
    %c17 = arith.constant 17 : index
    %255 = vector.load %arg2[%c0_31, %c17] : memref<8x36xf32, #tpu.memory_space<vmem>>, vector<8x1xf32>
    %256 = vector.shape_cast %255 : vector<8x1xf32> to vector<8x1xf32>
    %257 = vector.broadcast %256 : vector<8x1xf32> to vector<8x256xf32>
    %258 = vector.extract_strided_slice %0 {offsets = [1, 0], sizes = [1, 256], strides = [1, 1]} : vector<8x256xf32> to vector<1x256xf32>
    %259 = vector.shape_cast %258 : vector<1x256xf32> to vector<1x256xf32>
    %260 = vector.broadcast %259 : vector<1x256xf32> to vector<8x256xf32>
    %261 = arith.mulf %257, %260 : vector<8x256xf32>
    %262 = arith.addf %249, %261 : vector<8x256xf32>
    %263 = vector.extract_strided_slice %0 {offsets = [5, 0], sizes = [1, 256], strides = [1, 1]} : vector<8x256xf32> to vector<1x256xf32>
    %264 = vector.shape_cast %263 : vector<1x256xf32> to vector<1x256xf32>
    %265 = vector.broadcast %264 : vector<1x256xf32> to vector<8x256xf32>
    %266 = arith.mulf %257, %265 : vector<8x256xf32>
    %267 = arith.addf %254, %266 : vector<8x256xf32>
    %c0_32 = arith.constant 0 : index
    %c18 = arith.constant 18 : index
    %268 = vector.load %arg2[%c0_32, %c18] : memref<8x36xf32, #tpu.memory_space<vmem>>, vector<8x1xf32>
    %269 = vector.shape_cast %268 : vector<8x1xf32> to vector<8x1xf32>
    %270 = vector.broadcast %269 : vector<8x1xf32> to vector<8x256xf32>
    %271 = vector.extract_strided_slice %0 {offsets = [2, 0], sizes = [1, 256], strides = [1, 1]} : vector<8x256xf32> to vector<1x256xf32>
    %272 = vector.shape_cast %271 : vector<1x256xf32> to vector<1x256xf32>
    %273 = vector.broadcast %272 : vector<1x256xf32> to vector<8x256xf32>
    %274 = arith.mulf %270, %273 : vector<8x256xf32>
    %275 = arith.addf %262, %274 : vector<8x256xf32>
    %276 = vector.extract_strided_slice %0 {offsets = [6, 0], sizes = [1, 256], strides = [1, 1]} : vector<8x256xf32> to vector<1x256xf32>
    %277 = vector.shape_cast %276 : vector<1x256xf32> to vector<1x256xf32>
    %278 = vector.broadcast %277 : vector<1x256xf32> to vector<8x256xf32>
    %279 = arith.mulf %270, %278 : vector<8x256xf32>
    %280 = arith.addf %267, %279 : vector<8x256xf32>
    %c0_33 = arith.constant 0 : index
    %c19 = arith.constant 19 : index
    %281 = vector.load %arg2[%c0_33, %c19] : memref<8x36xf32, #tpu.memory_space<vmem>>, vector<8x1xf32>
    %282 = vector.shape_cast %281 : vector<8x1xf32> to vector<8x1xf32>
    %283 = vector.broadcast %282 : vector<8x1xf32> to vector<8x256xf32>
    %284 = vector.extract_strided_slice %0 {offsets = [3, 0], sizes = [1, 256], strides = [1, 1]} : vector<8x256xf32> to vector<1x256xf32>
    %285 = vector.shape_cast %284 : vector<1x256xf32> to vector<1x256xf32>
    %286 = vector.broadcast %285 : vector<1x256xf32> to vector<8x256xf32>
    %287 = arith.mulf %283, %286 : vector<8x256xf32>
    %288 = arith.addf %275, %287 : vector<8x256xf32>
    %289 = vector.extract_strided_slice %0 {offsets = [7, 0], sizes = [1, 256], strides = [1, 1]} : vector<8x256xf32> to vector<1x256xf32>
    %290 = vector.shape_cast %289 : vector<1x256xf32> to vector<1x256xf32>
    %291 = vector.broadcast %290 : vector<1x256xf32> to vector<8x256xf32>
    %292 = arith.mulf %283, %291 : vector<8x256xf32>
    %293 = arith.addf %280, %292 : vector<8x256xf32>
    %c255_i32 = arith.constant 255 : i32
    %294 = tpu.dynamic_rotate %0 by %c255_i32 dim 1 : vector<8x256xf32>, i32 -> vector<8x256xf32>
    %c15_i32_34 = arith.constant 15 : i32
    %295 = vector.broadcast %c15_i32_34 : i32 to vector<8x256xi32>
    %296 = arith.cmpi slt, %3, %295 : vector<8x256xi32>
    %cst_35 = arith.constant 0.000000e+00 : f32
    %297 = vector.broadcast %cst_35 : f32 to vector<8x256xf32>
    %298 = arith.select %296, %294, %297 : vector<8x256xi1>, vector<8x256xf32>
    %c0_36 = arith.constant 0 : index
    %c20 = arith.constant 20 : index
    %299 = vector.load %arg2[%c0_36, %c20] : memref<8x36xf32, #tpu.memory_space<vmem>>, vector<8x1xf32>
    %300 = vector.shape_cast %299 : vector<8x1xf32> to vector<8x1xf32>
    %301 = vector.broadcast %300 : vector<8x1xf32> to vector<8x256xf32>
    %302 = vector.extract_strided_slice %298 {offsets = [0, 0], sizes = [1, 256], strides = [1, 1]} : vector<8x256xf32> to vector<1x256xf32>
    %303 = vector.shape_cast %302 : vector<1x256xf32> to vector<1x256xf32>
    %304 = vector.broadcast %303 : vector<1x256xf32> to vector<8x256xf32>
    %305 = arith.mulf %301, %304 : vector<8x256xf32>
    %306 = arith.addf %288, %305 : vector<8x256xf32>
    %307 = vector.extract_strided_slice %298 {offsets = [4, 0], sizes = [1, 256], strides = [1, 1]} : vector<8x256xf32> to vector<1x256xf32>
    %308 = vector.shape_cast %307 : vector<1x256xf32> to vector<1x256xf32>
    %309 = vector.broadcast %308 : vector<1x256xf32> to vector<8x256xf32>
    %310 = arith.mulf %301, %309 : vector<8x256xf32>
    %311 = arith.addf %293, %310 : vector<8x256xf32>
    %c0_37 = arith.constant 0 : index
    %c21 = arith.constant 21 : index
    %312 = vector.load %arg2[%c0_37, %c21] : memref<8x36xf32, #tpu.memory_space<vmem>>, vector<8x1xf32>
    %313 = vector.shape_cast %312 : vector<8x1xf32> to vector<8x1xf32>
    %314 = vector.broadcast %313 : vector<8x1xf32> to vector<8x256xf32>
    %315 = vector.extract_strided_slice %298 {offsets = [1, 0], sizes = [1, 256], strides = [1, 1]} : vector<8x256xf32> to vector<1x256xf32>
    %316 = vector.shape_cast %315 : vector<1x256xf32> to vector<1x256xf32>
    %317 = vector.broadcast %316 : vector<1x256xf32> to vector<8x256xf32>
    %318 = arith.mulf %314, %317 : vector<8x256xf32>
    %319 = arith.addf %306, %318 : vector<8x256xf32>
    %320 = vector.extract_strided_slice %298 {offsets = [5, 0], sizes = [1, 256], strides = [1, 1]} : vector<8x256xf32> to vector<1x256xf32>
    %321 = vector.shape_cast %320 : vector<1x256xf32> to vector<1x256xf32>
    %322 = vector.broadcast %321 : vector<1x256xf32> to vector<8x256xf32>
    %323 = arith.mulf %314, %322 : vector<8x256xf32>
    %324 = arith.addf %311, %323 : vector<8x256xf32>
    %c0_38 = arith.constant 0 : index
    %c22 = arith.constant 22 : index
    %325 = vector.load %arg2[%c0_38, %c22] : memref<8x36xf32, #tpu.memory_space<vmem>>, vector<8x1xf32>
    %326 = vector.shape_cast %325 : vector<8x1xf32> to vector<8x1xf32>
    %327 = vector.broadcast %326 : vector<8x1xf32> to vector<8x256xf32>
    %328 = vector.extract_strided_slice %298 {offsets = [2, 0], sizes = [1, 256], strides = [1, 1]} : vector<8x256xf32> to vector<1x256xf32>
    %329 = vector.shape_cast %328 : vector<1x256xf32> to vector<1x256xf32>
    %330 = vector.broadcast %329 : vector<1x256xf32> to vector<8x256xf32>
    %331 = arith.mulf %327, %330 : vector<8x256xf32>
    %332 = arith.addf %319, %331 : vector<8x256xf32>
    %333 = vector.extract_strided_slice %298 {offsets = [6, 0], sizes = [1, 256], strides = [1, 1]} : vector<8x256xf32> to vector<1x256xf32>
    %334 = vector.shape_cast %333 : vector<1x256xf32> to vector<1x256xf32>
    %335 = vector.broadcast %334 : vector<1x256xf32> to vector<8x256xf32>
    %336 = arith.mulf %327, %335 : vector<8x256xf32>
    %337 = arith.addf %324, %336 : vector<8x256xf32>
    %c0_39 = arith.constant 0 : index
    %c23 = arith.constant 23 : index
    %338 = vector.load %arg2[%c0_39, %c23] : memref<8x36xf32, #tpu.memory_space<vmem>>, vector<8x1xf32>
    %339 = vector.shape_cast %338 : vector<8x1xf32> to vector<8x1xf32>
    %340 = vector.broadcast %339 : vector<8x1xf32> to vector<8x256xf32>
    %341 = vector.extract_strided_slice %298 {offsets = [3, 0], sizes = [1, 256], strides = [1, 1]} : vector<8x256xf32> to vector<1x256xf32>
    %342 = vector.shape_cast %341 : vector<1x256xf32> to vector<1x256xf32>
    %343 = vector.broadcast %342 : vector<1x256xf32> to vector<8x256xf32>
    %344 = arith.mulf %340, %343 : vector<8x256xf32>
    %345 = arith.addf %332, %344 : vector<8x256xf32>
    %346 = vector.extract_strided_slice %298 {offsets = [7, 0], sizes = [1, 256], strides = [1, 1]} : vector<8x256xf32> to vector<1x256xf32>
    %347 = vector.shape_cast %346 : vector<1x256xf32> to vector<1x256xf32>
    %348 = vector.broadcast %347 : vector<1x256xf32> to vector<8x256xf32>
    %349 = arith.mulf %340, %348 : vector<8x256xf32>
    %350 = arith.addf %337, %349 : vector<8x256xf32>
    %c241_i32 = arith.constant 241 : i32
    %351 = tpu.dynamic_rotate %0 by %c241_i32 dim 1 : vector<8x256xf32>, i32 -> vector<8x256xf32>
    %c15_i32_40 = arith.constant 15 : i32
    %352 = vector.broadcast %c15_i32_40 : i32 to vector<8x256xi32>
    %353 = arith.cmpi slt, %5, %352 : vector<8x256xi32>
    %c1_i32_41 = arith.constant 1 : i32
    %354 = vector.broadcast %c1_i32_41 : i32 to vector<8x256xi32>
    %355 = arith.cmpi sge, %3, %354 : vector<8x256xi32>
    %356 = arith.andi %353, %355 : vector<8x256xi1>
    %cst_42 = arith.constant 0.000000e+00 : f32
    %357 = vector.broadcast %cst_42 : f32 to vector<8x256xf32>
    %358 = arith.select %356, %351, %357 : vector<8x256xi1>, vector<8x256xf32>
    %c0_43 = arith.constant 0 : index
    %c24 = arith.constant 24 : index
    %359 = vector.load %arg2[%c0_43, %c24] : memref<8x36xf32, #tpu.memory_space<vmem>>, vector<8x1xf32>
    %360 = vector.shape_cast %359 : vector<8x1xf32> to vector<8x1xf32>
    %361 = vector.broadcast %360 : vector<8x1xf32> to vector<8x256xf32>
    %362 = vector.extract_strided_slice %358 {offsets = [0, 0], sizes = [1, 256], strides = [1, 1]} : vector<8x256xf32> to vector<1x256xf32>
    %363 = vector.shape_cast %362 : vector<1x256xf32> to vector<1x256xf32>
    %364 = vector.broadcast %363 : vector<1x256xf32> to vector<8x256xf32>
    %365 = arith.mulf %361, %364 : vector<8x256xf32>
    %366 = arith.addf %345, %365 : vector<8x256xf32>
    %367 = vector.extract_strided_slice %358 {offsets = [4, 0], sizes = [1, 256], strides = [1, 1]} : vector<8x256xf32> to vector<1x256xf32>
    %368 = vector.shape_cast %367 : vector<1x256xf32> to vector<1x256xf32>
    %369 = vector.broadcast %368 : vector<1x256xf32> to vector<8x256xf32>
    %370 = arith.mulf %361, %369 : vector<8x256xf32>
    %371 = arith.addf %350, %370 : vector<8x256xf32>
    %c0_44 = arith.constant 0 : index
    %c25 = arith.constant 25 : index
    %372 = vector.load %arg2[%c0_44, %c25] : memref<8x36xf32, #tpu.memory_space<vmem>>, vector<8x1xf32>
    %373 = vector.shape_cast %372 : vector<8x1xf32> to vector<8x1xf32>
    %374 = vector.broadcast %373 : vector<8x1xf32> to vector<8x256xf32>
    %375 = vector.extract_strided_slice %358 {offsets = [1, 0], sizes = [1, 256], strides = [1, 1]} : vector<8x256xf32> to vector<1x256xf32>
    %376 = vector.shape_cast %375 : vector<1x256xf32> to vector<1x256xf32>
    %377 = vector.broadcast %376 : vector<1x256xf32> to vector<8x256xf32>
    %378 = arith.mulf %374, %377 : vector<8x256xf32>
    %379 = arith.addf %366, %378 : vector<8x256xf32>
    %380 = vector.extract_strided_slice %358 {offsets = [5, 0], sizes = [1, 256], strides = [1, 1]} : vector<8x256xf32> to vector<1x256xf32>
    %381 = vector.shape_cast %380 : vector<1x256xf32> to vector<1x256xf32>
    %382 = vector.broadcast %381 : vector<1x256xf32> to vector<8x256xf32>
    %383 = arith.mulf %374, %382 : vector<8x256xf32>
    %384 = arith.addf %371, %383 : vector<8x256xf32>
    %c0_45 = arith.constant 0 : index
    %c26 = arith.constant 26 : index
    %385 = vector.load %arg2[%c0_45, %c26] : memref<8x36xf32, #tpu.memory_space<vmem>>, vector<8x1xf32>
    %386 = vector.shape_cast %385 : vector<8x1xf32> to vector<8x1xf32>
    %387 = vector.broadcast %386 : vector<8x1xf32> to vector<8x256xf32>
    %388 = vector.extract_strided_slice %358 {offsets = [2, 0], sizes = [1, 256], strides = [1, 1]} : vector<8x256xf32> to vector<1x256xf32>
    %389 = vector.shape_cast %388 : vector<1x256xf32> to vector<1x256xf32>
    %390 = vector.broadcast %389 : vector<1x256xf32> to vector<8x256xf32>
    %391 = arith.mulf %387, %390 : vector<8x256xf32>
    %392 = arith.addf %379, %391 : vector<8x256xf32>
    %393 = vector.extract_strided_slice %358 {offsets = [6, 0], sizes = [1, 256], strides = [1, 1]} : vector<8x256xf32> to vector<1x256xf32>
    %394 = vector.shape_cast %393 : vector<1x256xf32> to vector<1x256xf32>
    %395 = vector.broadcast %394 : vector<1x256xf32> to vector<8x256xf32>
    %396 = arith.mulf %387, %395 : vector<8x256xf32>
    %397 = arith.addf %384, %396 : vector<8x256xf32>
    %c0_46 = arith.constant 0 : index
    %c27 = arith.constant 27 : index
    %398 = vector.load %arg2[%c0_46, %c27] : memref<8x36xf32, #tpu.memory_space<vmem>>, vector<8x1xf32>
    %399 = vector.shape_cast %398 : vector<8x1xf32> to vector<8x1xf32>
    %400 = vector.broadcast %399 : vector<8x1xf32> to vector<8x256xf32>
    %401 = vector.extract_strided_slice %358 {offsets = [3, 0], sizes = [1, 256], strides = [1, 1]} : vector<8x256xf32> to vector<1x256xf32>
    %402 = vector.shape_cast %401 : vector<1x256xf32> to vector<1x256xf32>
    %403 = vector.broadcast %402 : vector<1x256xf32> to vector<8x256xf32>
    %404 = arith.mulf %400, %403 : vector<8x256xf32>
    %405 = arith.addf %392, %404 : vector<8x256xf32>
    %406 = vector.extract_strided_slice %358 {offsets = [7, 0], sizes = [1, 256], strides = [1, 1]} : vector<8x256xf32> to vector<1x256xf32>
    %407 = vector.shape_cast %406 : vector<1x256xf32> to vector<1x256xf32>
    %408 = vector.broadcast %407 : vector<1x256xf32> to vector<8x256xf32>
    %409 = arith.mulf %400, %408 : vector<8x256xf32>
    %410 = arith.addf %397, %409 : vector<8x256xf32>
    %c240_i32 = arith.constant 240 : i32
    %411 = tpu.dynamic_rotate %0 by %c240_i32 dim 1 : vector<8x256xf32>, i32 -> vector<8x256xf32>
    %c15_i32_47 = arith.constant 15 : i32
    %412 = vector.broadcast %c15_i32_47 : i32 to vector<8x256xi32>
    %413 = arith.cmpi slt, %5, %412 : vector<8x256xi32>
    %cst_48 = arith.constant 0.000000e+00 : f32
    %414 = vector.broadcast %cst_48 : f32 to vector<8x256xf32>
    %415 = arith.select %413, %411, %414 : vector<8x256xi1>, vector<8x256xf32>
    %c0_49 = arith.constant 0 : index
    %c28 = arith.constant 28 : index
    %416 = vector.load %arg2[%c0_49, %c28] : memref<8x36xf32, #tpu.memory_space<vmem>>, vector<8x1xf32>
    %417 = vector.shape_cast %416 : vector<8x1xf32> to vector<8x1xf32>
    %418 = vector.broadcast %417 : vector<8x1xf32> to vector<8x256xf32>
    %419 = vector.extract_strided_slice %415 {offsets = [0, 0], sizes = [1, 256], strides = [1, 1]} : vector<8x256xf32> to vector<1x256xf32>
    %420 = vector.shape_cast %419 : vector<1x256xf32> to vector<1x256xf32>
    %421 = vector.broadcast %420 : vector<1x256xf32> to vector<8x256xf32>
    %422 = arith.mulf %418, %421 : vector<8x256xf32>
    %423 = arith.addf %405, %422 : vector<8x256xf32>
    %424 = vector.extract_strided_slice %415 {offsets = [4, 0], sizes = [1, 256], strides = [1, 1]} : vector<8x256xf32> to vector<1x256xf32>
    %425 = vector.shape_cast %424 : vector<1x256xf32> to vector<1x256xf32>
    %426 = vector.broadcast %425 : vector<1x256xf32> to vector<8x256xf32>
    %427 = arith.mulf %418, %426 : vector<8x256xf32>
    %428 = arith.addf %410, %427 : vector<8x256xf32>
    %c0_50 = arith.constant 0 : index
    %c29 = arith.constant 29 : index
    %429 = vector.load %arg2[%c0_50, %c29] : memref<8x36xf32, #tpu.memory_space<vmem>>, vector<8x1xf32>
    %430 = vector.shape_cast %429 : vector<8x1xf32> to vector<8x1xf32>
    %431 = vector.broadcast %430 : vector<8x1xf32> to vector<8x256xf32>
    %432 = vector.extract_strided_slice %415 {offsets = [1, 0], sizes = [1, 256], strides = [1, 1]} : vector<8x256xf32> to vector<1x256xf32>
    %433 = vector.shape_cast %432 : vector<1x256xf32> to vector<1x256xf32>
    %434 = vector.broadcast %433 : vector<1x256xf32> to vector<8x256xf32>
    %435 = arith.mulf %431, %434 : vector<8x256xf32>
    %436 = arith.addf %423, %435 : vector<8x256xf32>
    %437 = vector.extract_strided_slice %415 {offsets = [5, 0], sizes = [1, 256], strides = [1, 1]} : vector<8x256xf32> to vector<1x256xf32>
    %438 = vector.shape_cast %437 : vector<1x256xf32> to vector<1x256xf32>
    %439 = vector.broadcast %438 : vector<1x256xf32> to vector<8x256xf32>
    %440 = arith.mulf %431, %439 : vector<8x256xf32>
    %441 = arith.addf %428, %440 : vector<8x256xf32>
    %c0_51 = arith.constant 0 : index
    %c30 = arith.constant 30 : index
    %442 = vector.load %arg2[%c0_51, %c30] : memref<8x36xf32, #tpu.memory_space<vmem>>, vector<8x1xf32>
    %443 = vector.shape_cast %442 : vector<8x1xf32> to vector<8x1xf32>
    %444 = vector.broadcast %443 : vector<8x1xf32> to vector<8x256xf32>
    %445 = vector.extract_strided_slice %415 {offsets = [2, 0], sizes = [1, 256], strides = [1, 1]} : vector<8x256xf32> to vector<1x256xf32>
    %446 = vector.shape_cast %445 : vector<1x256xf32> to vector<1x256xf32>
    %447 = vector.broadcast %446 : vector<1x256xf32> to vector<8x256xf32>
    %448 = arith.mulf %444, %447 : vector<8x256xf32>
    %449 = arith.addf %436, %448 : vector<8x256xf32>
    %450 = vector.extract_strided_slice %415 {offsets = [6, 0], sizes = [1, 256], strides = [1, 1]} : vector<8x256xf32> to vector<1x256xf32>
    %451 = vector.shape_cast %450 : vector<1x256xf32> to vector<1x256xf32>
    %452 = vector.broadcast %451 : vector<1x256xf32> to vector<8x256xf32>
    %453 = arith.mulf %444, %452 : vector<8x256xf32>
    %454 = arith.addf %441, %453 : vector<8x256xf32>
    %c0_52 = arith.constant 0 : index
    %c31 = arith.constant 31 : index
    %455 = vector.load %arg2[%c0_52, %c31] : memref<8x36xf32, #tpu.memory_space<vmem>>, vector<8x1xf32>
    %456 = vector.shape_cast %455 : vector<8x1xf32> to vector<8x1xf32>
    %457 = vector.broadcast %456 : vector<8x1xf32> to vector<8x256xf32>
    %458 = vector.extract_strided_slice %415 {offsets = [3, 0], sizes = [1, 256], strides = [1, 1]} : vector<8x256xf32> to vector<1x256xf32>
    %459 = vector.shape_cast %458 : vector<1x256xf32> to vector<1x256xf32>
    %460 = vector.broadcast %459 : vector<1x256xf32> to vector<8x256xf32>
    %461 = arith.mulf %457, %460 : vector<8x256xf32>
    %462 = arith.addf %449, %461 : vector<8x256xf32>
    %463 = vector.extract_strided_slice %415 {offsets = [7, 0], sizes = [1, 256], strides = [1, 1]} : vector<8x256xf32> to vector<1x256xf32>
    %464 = vector.shape_cast %463 : vector<1x256xf32> to vector<1x256xf32>
    %465 = vector.broadcast %464 : vector<1x256xf32> to vector<8x256xf32>
    %466 = arith.mulf %457, %465 : vector<8x256xf32>
    %467 = arith.addf %454, %466 : vector<8x256xf32>
    %c239_i32 = arith.constant 239 : i32
    %468 = tpu.dynamic_rotate %0 by %c239_i32 dim 1 : vector<8x256xf32>, i32 -> vector<8x256xf32>
    %c15_i32_53 = arith.constant 15 : i32
    %469 = vector.broadcast %c15_i32_53 : i32 to vector<8x256xi32>
    %470 = arith.cmpi slt, %5, %469 : vector<8x256xi32>
    %c15_i32_54 = arith.constant 15 : i32
    %471 = vector.broadcast %c15_i32_54 : i32 to vector<8x256xi32>
    %472 = arith.cmpi slt, %3, %471 : vector<8x256xi32>
    %473 = arith.andi %470, %472 : vector<8x256xi1>
    %cst_55 = arith.constant 0.000000e+00 : f32
    %474 = vector.broadcast %cst_55 : f32 to vector<8x256xf32>
    %475 = arith.select %473, %468, %474 : vector<8x256xi1>, vector<8x256xf32>
    %c0_56 = arith.constant 0 : index
    %c32 = arith.constant 32 : index
    %476 = vector.load %arg2[%c0_56, %c32] : memref<8x36xf32, #tpu.memory_space<vmem>>, vector<8x1xf32>
    %477 = vector.shape_cast %476 : vector<8x1xf32> to vector<8x1xf32>
    %478 = vector.broadcast %477 : vector<8x1xf32> to vector<8x256xf32>
    %479 = vector.extract_strided_slice %475 {offsets = [0, 0], sizes = [1, 256], strides = [1, 1]} : vector<8x256xf32> to vector<1x256xf32>
    %480 = vector.shape_cast %479 : vector<1x256xf32> to vector<1x256xf32>
    %481 = vector.broadcast %480 : vector<1x256xf32> to vector<8x256xf32>
    %482 = arith.mulf %478, %481 : vector<8x256xf32>
    %483 = arith.addf %462, %482 : vector<8x256xf32>
    %484 = vector.extract_strided_slice %475 {offsets = [4, 0], sizes = [1, 256], strides = [1, 1]} : vector<8x256xf32> to vector<1x256xf32>
    %485 = vector.shape_cast %484 : vector<1x256xf32> to vector<1x256xf32>
    %486 = vector.broadcast %485 : vector<1x256xf32> to vector<8x256xf32>
    %487 = arith.mulf %478, %486 : vector<8x256xf32>
    %488 = arith.addf %467, %487 : vector<8x256xf32>
    %c0_57 = arith.constant 0 : index
    %c33 = arith.constant 33 : index
    %489 = vector.load %arg2[%c0_57, %c33] : memref<8x36xf32, #tpu.memory_space<vmem>>, vector<8x1xf32>
    %490 = vector.shape_cast %489 : vector<8x1xf32> to vector<8x1xf32>
    %491 = vector.broadcast %490 : vector<8x1xf32> to vector<8x256xf32>
    %492 = vector.extract_strided_slice %475 {offsets = [1, 0], sizes = [1, 256], strides = [1, 1]} : vector<8x256xf32> to vector<1x256xf32>
    %493 = vector.shape_cast %492 : vector<1x256xf32> to vector<1x256xf32>
    %494 = vector.broadcast %493 : vector<1x256xf32> to vector<8x256xf32>
    %495 = arith.mulf %491, %494 : vector<8x256xf32>
    %496 = arith.addf %483, %495 : vector<8x256xf32>
    %497 = vector.extract_strided_slice %475 {offsets = [5, 0], sizes = [1, 256], strides = [1, 1]} : vector<8x256xf32> to vector<1x256xf32>
    %498 = vector.shape_cast %497 : vector<1x256xf32> to vector<1x256xf32>
    %499 = vector.broadcast %498 : vector<1x256xf32> to vector<8x256xf32>
    %500 = arith.mulf %491, %499 : vector<8x256xf32>
    %501 = arith.addf %488, %500 : vector<8x256xf32>
    %c0_58 = arith.constant 0 : index
    %c34 = arith.constant 34 : index
    %502 = vector.load %arg2[%c0_58, %c34] : memref<8x36xf32, #tpu.memory_space<vmem>>, vector<8x1xf32>
    %503 = vector.shape_cast %502 : vector<8x1xf32> to vector<8x1xf32>
    %504 = vector.broadcast %503 : vector<8x1xf32> to vector<8x256xf32>
    %505 = vector.extract_strided_slice %475 {offsets = [2, 0], sizes = [1, 256], strides = [1, 1]} : vector<8x256xf32> to vector<1x256xf32>
    %506 = vector.shape_cast %505 : vector<1x256xf32> to vector<1x256xf32>
    %507 = vector.broadcast %506 : vector<1x256xf32> to vector<8x256xf32>
    %508 = arith.mulf %504, %507 : vector<8x256xf32>
    %509 = arith.addf %496, %508 : vector<8x256xf32>
    %510 = vector.extract_strided_slice %475 {offsets = [6, 0], sizes = [1, 256], strides = [1, 1]} : vector<8x256xf32> to vector<1x256xf32>
    %511 = vector.shape_cast %510 : vector<1x256xf32> to vector<1x256xf32>
    %512 = vector.broadcast %511 : vector<1x256xf32> to vector<8x256xf32>
    %513 = arith.mulf %504, %512 : vector<8x256xf32>
    %514 = arith.addf %501, %513 : vector<8x256xf32>
    %c0_59 = arith.constant 0 : index
    %c35 = arith.constant 35 : index
    %515 = vector.load %arg2[%c0_59, %c35] : memref<8x36xf32, #tpu.memory_space<vmem>>, vector<8x1xf32>
    %516 = vector.shape_cast %515 : vector<8x1xf32> to vector<8x1xf32>
    %517 = vector.broadcast %516 : vector<8x1xf32> to vector<8x256xf32>
    %518 = vector.extract_strided_slice %475 {offsets = [3, 0], sizes = [1, 256], strides = [1, 1]} : vector<8x256xf32> to vector<1x256xf32>
    %519 = vector.shape_cast %518 : vector<1x256xf32> to vector<1x256xf32>
    %520 = vector.broadcast %519 : vector<1x256xf32> to vector<8x256xf32>
    %521 = arith.mulf %517, %520 : vector<8x256xf32>
    %522 = arith.addf %509, %521 : vector<8x256xf32>
    %523 = vector.extract_strided_slice %475 {offsets = [7, 0], sizes = [1, 256], strides = [1, 1]} : vector<8x256xf32> to vector<1x256xf32>
    %524 = vector.shape_cast %523 : vector<1x256xf32> to vector<1x256xf32>
    %525 = vector.broadcast %524 : vector<1x256xf32> to vector<8x256xf32>
    %526 = arith.mulf %517, %525 : vector<8x256xf32>
    %527 = arith.addf %514, %526 : vector<8x256xf32>
    %c0_60 = arith.constant 0 : index
    %c0_61 = arith.constant 0 : index
    %528 = vector.load %arg3[%c0_60, %c0_61] : memref<8x1xf32, #tpu.memory_space<vmem>>, vector<8x1xf32>
    %c0_62 = arith.constant 0 : index
    %c0_63 = arith.constant 0 : index
    %529 = vector.load %arg4[%c0_62, %c0_63] : memref<8x32xf32, #tpu.memory_space<vmem>>, vector<8x32xf32>
    %c0_64 = arith.constant 0 : index
    %c0_65 = arith.constant 0 : index
    %530 = vector.load %arg5[%c0_64, %c0_65] : memref<1x32xf32, #tpu.memory_space<vmem>>, vector<1x32xf32>
    %531 = vector.broadcast %528 : vector<8x1xf32> to vector<8x256xf32>
    %532 = arith.addf %522, %531 : vector<8x256xf32>
    %cst_66 = arith.constant 0.000000e+00 : f32
    %533 = vector.broadcast %cst_66 : f32 to vector<8x256xf32>
    %534 = arith.maximumf %532, %533 : vector<8x256xf32>
    %cst_67 = arith.constant dense<0.000000e+00> : vector<8xf32>
    %535 = vector.multi_reduction <add>, %534, %cst_67 [1] : vector<8x256xf32> to vector<8xf32>
    %536 = vector.shape_cast %535 : vector<8xf32> to vector<8x1xf32>
    %537 = vector.broadcast %536 : vector<8x1xf32> to vector<8x32xf32>
    %538 = arith.mulf %537, %529 : vector<8x32xf32>
    %cst_68 = arith.constant dense<0.000000e+00> : vector<32xf32>
    %539 = vector.multi_reduction <add>, %538, %cst_68 [0] : vector<8x32xf32> to vector<32xf32>
    %540 = vector.shape_cast %539 : vector<32xf32> to vector<1x32xf32>
    %541 = arith.addf %540, %530 : vector<1x32xf32>
    %542 = arith.mulf %541, %541 : vector<1x32xf32>
    %cst_69 = arith.constant dense<0.000000e+00> : vector<1xf32>
    %543 = vector.multi_reduction <add>, %542, %cst_69 [1] : vector<1x32xf32> to vector<1xf32>
    %544 = vector.shape_cast %543 : vector<1xf32> to vector<1x1xf32>
    %cst_70 = arith.constant 1.000000e-24 : f32
    %545 = vector.broadcast %cst_70 : f32 to vector<1x1xf32>
    %546 = arith.maximumf %544, %545 : vector<1x1xf32>
    %547 = math.rsqrt %546 : vector<1x1xf32>
    %548 = vector.broadcast %547 : vector<1x1xf32> to vector<1x32xf32>
    %549 = arith.mulf %541, %548 : vector<1x32xf32>
    %550 = vector.broadcast %528 : vector<8x1xf32> to vector<8x256xf32>
    %551 = arith.addf %527, %550 : vector<8x256xf32>
    %cst_71 = arith.constant 0.000000e+00 : f32
    %552 = vector.broadcast %cst_71 : f32 to vector<8x256xf32>
    %553 = arith.maximumf %551, %552 : vector<8x256xf32>
    %cst_72 = arith.constant dense<0.000000e+00> : vector<8xf32>
    %554 = vector.multi_reduction <add>, %553, %cst_72 [1] : vector<8x256xf32> to vector<8xf32>
    %555 = vector.shape_cast %554 : vector<8xf32> to vector<8x1xf32>
    %556 = vector.broadcast %555 : vector<8x1xf32> to vector<8x32xf32>
    %557 = arith.mulf %556, %529 : vector<8x32xf32>
    %cst_73 = arith.constant dense<0.000000e+00> : vector<32xf32>
    %558 = vector.multi_reduction <add>, %557, %cst_73 [0] : vector<8x32xf32> to vector<32xf32>
    %559 = vector.shape_cast %558 : vector<32xf32> to vector<1x32xf32>
    %560 = arith.addf %559, %530 : vector<1x32xf32>
    %561 = arith.mulf %560, %560 : vector<1x32xf32>
    %cst_74 = arith.constant dense<0.000000e+00> : vector<1xf32>
    %562 = vector.multi_reduction <add>, %561, %cst_74 [1] : vector<1x32xf32> to vector<1xf32>
    %563 = vector.shape_cast %562 : vector<1xf32> to vector<1x1xf32>
    %cst_75 = arith.constant 1.000000e-24 : f32
    %564 = vector.broadcast %cst_75 : f32 to vector<1x1xf32>
    %565 = arith.maximumf %563, %564 : vector<1x1xf32>
    %566 = math.rsqrt %565 : vector<1x1xf32>
    %567 = vector.broadcast %566 : vector<1x1xf32> to vector<1x32xf32>
    %568 = arith.mulf %560, %567 : vector<1x32xf32>
    %569 = tpu.concatenate %549, %568 in 0 : vector<1x32xf32>, vector<1x32xf32> -> vector<2x32xf32>
    %c0_76 = arith.constant 0 : index
    %c0_77 = arith.constant 0 : index
    %570 = vector.load %arg6[%c0_76, %c0_77] : memref<2x32xf32, #tpu.memory_space<vmem>>, vector<2x32xf32>
    tpu.vector_store %arg6[%c0_76, %c0_77], %569 {strides = array<i32>} : memref<2x32xf32, #tpu.memory_space<vmem>>, vector<2x32xf32>,
    return
  }
  func.func @transform_0(%arg0: i32) -> (i32, i32) {
    %c0_i32 = arith.constant 0 : i32
    %c0_i32_0 = arith.constant 0 : i32
    %c0_i32_1 = arith.constant 0 : i32
    return %c0_i32, %c0_i32_0 : i32, i32
  }
  func.func @transform_1(%arg0: i32) -> (i32, i32) {
    %c0_i32 = arith.constant 0 : i32
    %c0_i32_0 = arith.constant 0 : i32
    %c0_i32_1 = arith.constant 0 : i32
    return %c0_i32, %c0_i32_0 : i32, i32
  }
  func.func @transform_2(%arg0: i32) -> (i32, i32) {
    %c0_i32 = arith.constant 0 : i32
    %c0_i32_0 = arith.constant 0 : i32
    %c0_i32_1 = arith.constant 0 : i32
    return %c0_i32, %c0_i32_0 : i32, i32
  }
  func.func @transform_3(%arg0: i32) -> (i32, i32) {
    %c0_i32 = arith.constant 0 : i32
    %c0_i32_0 = arith.constant 0 : i32
    %c0_i32_1 = arith.constant 0 : i32
    return %c0_i32, %c0_i32_0 : i32, i32
  }
  func.func @transform_4(%arg0: i32) -> (i32, i32) {
    %c0_i32 = arith.constant 0 : i32
    %c0_i32_0 = arith.constant 0 : i32
    %c0_i32_1 = arith.constant 0 : i32
    return %c0_i32, %c0_i32_0 : i32, i32
  }
  func.func @transform_5(%arg0: i32) -> (i32, i32) {
    %c0_i32 = arith.constant 0 : i32
    %c0_i32_0 = arith.constant 0 : i32
    %c0_i32_1 = arith.constant 0 : i32
    return %c0_i32, %c0_i32_0 : i32, i32
  }
}

</mosaic_0001>

<bundles_post_ra>
// kernel: wrapped_distortion_facenet.1
= control target key start
LH: loop header
LB: loop body
LE: loop exit
PB: predicated region body
PF: predicated region fallthrough
CT: control target
= control target key end

     0   :  { %v1316_v1 = vmov 2   ;;  %v1317_v2 = vmov 0   ;;  %s1781_s0 = inlined_call_operand.vmem [shape: f32[8,256], index: 0, kind: input, shape index: {}]   ;;  %s1782_s1 = inlined_call_operand.vmem [shape: f32[8,36], index: 1, kind: input, shape index: {}]   ;;  %s1783_s2 = inlined_call_operand.vmem [shape: f32[8,1], index: 2, kind: input, shape index: {}]   ;;  %s1784_s3 = inlined_call_operand.vmem [shape: f32[8,32], index: 3, kind: input, shape index: {}]   ;;  %s1785_s4 = inlined_call_operand.vmem [shape: f32[1,32], index: 4, kind: input, shape index: {}]   ;;  %s1786_s5 = inlined_call_operand.hbm [shape: f32[2,32], index: 5, kind: output, shape index: {}]  }
   0x1   :  { %v1394_v0 = vld [vmem:[%s1782_s1] sm:$0xff]  ;;  %1252 = vset.pattern.permute.xlu1 %v1316_v1  ;;  %1250 = vset.pattern.permute.xlu0 %v1317_v2 }
   0x2   :  { %104 = vperm.xlu1 %1252, %v1394_v0   ;;  %48 = vperm.xlu0 %1250, %v1394_v0   ;;  %v1402_v3 = vld [vmem:[%s1781_s0] sm:$0xff] }
   0x3   :  { %10 = vsyncpa [#allocation3], 0  ;;  %s1318_s22 = smov 17   ;;  %v1319_v4 = vmov 1   ;;  %v1409_v5 = vld [vmem:[%s1781_s0 + $0x8] sm:$0xff]  ;;  %v1320_v6 = vmov 4   ;;  %v23_v37 = vlaneseq }
   0x4   :  { %v1321_v7 = vmov 3   ;;  %s1322_s24 = smov 16   ;;  %v1323_v8 = vmov 6   ;;  %v1324_v9 = vmov 5   ;;  %v1325_v10 = vmov 7   ;;  %s1330_s0 = smov 15  }
   0x5   :  { %v1326_v11 = vmov 9   ;;  %v1327_v12 = vmov 10   ;;  %v1328_v13 = vmov 8   ;;  %v1329_v14 = vmov 13   ;;  %s1336_s25 = smov 1   ;;  %s1338_s26 = smov 127  }
   0x6   :  { %30 = vrot.lane.b32.xlu1 %v1402_v3, %s1318_s22  ;;  %1251 = vset.pattern.permute.xlu0 %v1319_v4  ;;  %v1331_v15 = vmov 11   ;;  %v1332_v16 = vmov 14   ;;  %v1333_v17 = vmov 17   ;;  %v1334_v18 = vmov 12   ;;  %s1340_s27 = smov 113   ;;  %s1355_s28 = smov 112  }
   0x7   :  { %76 = vperm.xlu0 %1251, %v1394_v0   ;;  %1254 = vset.pattern.permute.xlu1 %v1320_v6  ;;  %v1335_v19 = vmov 20   ;;  %v1337_v20 = vmov 15   ;;  %v1339_v21 = vmov 23   ;;  %v1341_v22 = vmov 26   ;;  %s1358_s29 = smov 111  }
   0x8   :  { %v1342_v23 = vmov 16   ;;  %v1343_v24 = vmov 18   ;;  %v1344_v25 = vmov 29   ;;  %v1345_v26 = vmov 19  }
   0x9   :  { %v1346_v27 = vmov 30   ;;  %v1347_v28 = vmov 21   ;;  %v1348_v29 = vmov 33   ;;  %v1349_v30 = vmov 34  }
   0xa   :  { %32 = vrot.lane.b32.xlu1 %v1409_v5, %s1318_s22  ;;  %v1350_v31 = vmov 22   ;;  %v1351_v32 = vmov 24   ;;  %v1352_v33 = vmov 25   ;;  %v1353_v34 = vmov 27  }
   0xb   :  { %1253 = vset.pattern.permute.xlu0 %v1321_v7  ;;  %v1354_v35 = vmov 28   ;;  %v1356_v36 = vmov 31   ;;  %v1459_v38 = vand.u32 127, %v23_v37  ;;  %v1357_v40 = vmov 32  }
   0xc   :  { %132 = vperm.xlu0 %1253, %v1394_v0   ;;  %v52_v48 = vshrl.u32 %v23_v37, 7  ;;  %v1359_v53 = vmov 35  }
   0xd   :  { %v1463_v39 = vadd.s32 128, %v1459_v38  ;;  %v26_v41 = vand.u32 15, %v1459_v38  ;;  %v28_v42 = vshra.s32 %v1459_v38, 4  ;;  %vm34_vm4 = vcmp.lt.s32.totalorder %v1459_v38, 17 }
   0xe   :  { %169 = vperm.xlu1 %1254, %v1394_v0   ;;  %v1506_v54 = vsub.s32 0, %v52_v48  ;;  %v1508_v55 = vsub.s32 4, %v52_v48  ;;  %v1511_v57 = vsub.s32 1, %v52_v48  ;;  %v1513_v58 = vsub.s32 5, %v52_v48 }
   0xf   :  { %v27_v44 = vand.u32 15, %v1463_v39  ;;  %v29_v45 = vshra.s32 %v1463_v39, 4  ;;  %vm1474_vm0 = vcmp.ge.s32.totalorder %v28_v42, 1  ;;  %vm1480_vm1 = vcmp.ge.s32.totalorder %v26_v41, 1 }
  0x10   :  { %159 = vrot.lane.b32.xlu0 %v1402_v3, %s1322_s24  ;;  %vm41_vm5 = vmand %vm1474_vm0, %vm1480_vm1  ;;  %v1515_v61 = vsub.s32 2, %v52_v48  ;;  %v1517_v62 = vsub.s32 6, %v52_v48  ;;  %v1519_v6 = vsub.s32 3, %v52_v48  ;;  %v1521_v7 = vsub.s32 7, %v52_v48 }
  0x11   :  { %1256 = vset.pattern.permute.xlu0 %v1323_v8  ;;  %vm1487_vm2 = vcmp.ge.s32.totalorder %v29_v45, 1  ;;  %vm1493_vm3 = vcmp.ge.s32.totalorder %v27_v44, 1  ;;  %vm163_vm7 = vcmp.lt.s32.totalorder %v1459_v38, 16  ;;  %vm1567_vm8 = vcmp.lt.s32.totalorder %v26_v41, 15 }
  0x12   :  { %1255 = vset.pattern.permute.xlu1 %v1324_v9  ;;  %vm42_vm6 = vmand %vm1487_vm2, %vm1493_vm3  ;;  %vm1573_vm9 = vcmp.lt.s32.totalorder %v27_v44, 15  ;;  %vm284_vm10 = vcmp.lt.s32.totalorder %v1459_v38, 15  ;;  %vm409_vm13 = vcmp.lt.s32.totalorder %v1459_v38, 1  ;;  %vm642_vm14 = vcmp.lt.s32.totalorder %v1459_v38, 127 }
  0x13   :  { %197 = vperm.xlu1 %1255, %v1394_v0   ;;  %vm289_vm11 = vmand %vm1474_vm0, %vm1567_vm8  ;;  %vm1678_vm15 = vcmp.lt.s32.totalorder %v28_v42, 15 }
  0x14   :  { %225 = vperm.xlu0 %1256, %v1394_v0   ;;  %vm290_vm12 = vmand %vm1487_vm2, %vm1573_vm9 }
  0x17   :  { %161 = vrot.lane.b32.xlu1 %v1409_v5, %s1322_s24 }
  0x18   :  { %1257 = vset.pattern.permute.xlu1 %v1325_v10  ;;  %1259 = vset.pattern.permute.xlu0 %v1326_v11 }
  0x19   :  { %322 = vperm.xlu0 %1259, %v1394_v0  }
  0x1b   :  { %253 = vperm.xlu1 %1257, %v1394_v0  }
  0x1d   :  { %1260 = vset.pattern.permute.xlu0 %v1327_v12 }
  0x1e   :  { %350 = vperm.xlu0 %1260, %v1394_v0  }
  0x1f   :  { %1258 = vset.pattern.permute.xlu1 %v1328_v13 }
  0x20   :  { %294 = vperm.xlu1 %1258, %v1394_v0  }
  0x22   :  { %1263 = vset.pattern.permute.xlu0 %v1329_v14 }
  0x23   :  { %443 = vperm.xlu0 %1263, %v1394_v0  }
  0x24   :  { %280 = vrot.lane.b32.xlu1 %v1402_v3, %s1330_s0 }
  0x25   :  { %1261 = vset.pattern.permute.xlu1 %v1331_v15 }
  0x27   :  { %1264 = vset.pattern.permute.xlu0 %v1332_v16 }
  0x28   :  { %282 = vrot.lane.b32.xlu1 %v1409_v5, %s1330_s0  ;;  %471 = vperm.xlu0 %1264, %v1394_v0  }
  0x2c   :  { %378 = vperm.xlu1 %1261, %v1394_v0   ;;  %1267 = vset.pattern.permute.xlu0 %v1333_v17 }
  0x2d   :  { %555 = vperm.xlu0 %1267, %v1394_v0  }
  0x30   :  { %1262 = vset.pattern.permute.xlu1 %v1334_v18 }
  0x31   :  { %415 = vperm.xlu1 %1262, %v1394_v0   ;;  %1270 = vset.pattern.permute.xlu0 %v1335_v19 }
  0x32   :  { %648 = vperm.xlu0 %1270, %v1394_v0  }
  0x35   :  { %405 = vrot.lane.b32.xlu1 %v1402_v3, %s1336_s25 }
  0x36   :  { %1265 = vset.pattern.permute.xlu1 %v1337_v20  ;;  %640 = vrot.lane.b32.xlu0 %v1409_v5, %s1338_s26 }
  0x37   :  { %1273 = vset.pattern.permute.xlu0 %v1339_v21 }
  0x39   :  { %407 = vrot.lane.b32.xlu1 %v1409_v5, %s1336_s25 }
  0x3a   :  { %732 = vperm.xlu0 %1273, %v1394_v0  }
  0x3d   :  { %499 = vperm.xlu1 %1265, %v1394_v0  }
  0x3e   :  { %759 = vrot.lane.b32.xlu0 %v1402_v3, %s1340_s27 }
  0x3f   :  { %1276 = vset.pattern.permute.xlu0 %v1341_v22 }
  0x41   :  { %1266 = vset.pattern.permute.xlu1 %v1342_v23 }
  0x42   :  { %527 = vperm.xlu1 %1266, %v1394_v0   ;;  %829 = vperm.xlu0 %1276, %v1394_v0  }
  0x46   :  { %1268 = vset.pattern.permute.xlu1 %v1343_v24  ;;  %1279 = vset.pattern.permute.xlu0 %v1344_v25  ;;  %v1128_v25 = vld [vmem:[%s1783_s2] sm:$0xff] }
  0x47   :  { %583 = vperm.xlu1 %1268, %v1394_v0   ;;  %922 = vperm.xlu0 %1279, %v1394_v0  }
  0x4b   :  { %1269 = vset.pattern.permute.xlu1 %v1345_v26  ;;  %1280 = vset.pattern.permute.xlu0 %v1346_v27 }
  0x4c   :  { %611 = vperm.xlu1 %1269, %v1394_v0   ;;  %950 = vperm.xlu0 %1280, %v1394_v0  }
  0x50   :  { %1271 = vset.pattern.permute.xlu1 %v1347_v28  ;;  %1283 = vset.pattern.permute.xlu0 %v1348_v29 }
  0x51   :  { %676 = vperm.xlu1 %1271, %v1394_v0   ;;  %1045 = vperm.xlu0 %1283, %v1394_v0  }
  0x55   :  { %638 = vrot.lane.b32.xlu1 %v1402_v3, %s1338_s26  ;;  %1284 = vset.pattern.permute.xlu0 %v1349_v30 }
  0x56   :  { %1272 = vset.pattern.permute.xlu1 %v1350_v31  ;;  %1073 = vperm.xlu0 %1284, %v1394_v0  }
  0x59   :  { %704 = vperm.xlu1 %1272, %v1394_v0  }
  0x5a   :  { %1287 = vset.pattern.permute.xlu0 %v1317_v2 }
  0x5d   :  { %1274 = vset.pattern.permute.xlu1 %v1351_v32 }
  0x5e   :  { %773 = vperm.xlu1 %1274, %v1394_v0  }
  0x62   :  { %1275 = vset.pattern.permute.xlu1 %v1352_v33 }
  0x63   :  { %801 = vperm.xlu1 %1275, %v1394_v0  }
  0x67   :  { %761 = vrot.lane.b32.xlu1 %v1409_v5, %s1340_s27 }
  0x68   :  { %1277 = vset.pattern.permute.xlu1 %v1353_v34 }
  0x6b   :  { %857 = vperm.xlu1 %1277, %v1394_v0  }
  0x6f   :  { %1278 = vset.pattern.permute.xlu1 %v1354_v35 }
  0x70   :  { %894 = vperm.xlu1 %1278, %v1394_v0  }
  0x74   :  { %884 = vrot.lane.b32.xlu1 %v1402_v3, %s1355_s28 }
  0x75   :  { %1281 = vset.pattern.permute.xlu1 %v1356_v36 }
  0x78   :  { %886 = vrot.lane.b32.xlu1 %v1409_v5, %s1355_s28 }
  0x7c   :  { %978 = vperm.xlu1 %1281, %v1394_v0  }
  0x80   :  { %1282 = vset.pattern.permute.xlu1 %v1357_v40 }
  0x81   :  { %v1467_v43 = vpop.permute.xlu1 %104  ;;  %1017 = vperm.xlu1 %1282, %v1394_v0   ;;  %v49_v49 = vpop.permute.xlu0 %48 }
  0x85   :  { %1005 = vrot.lane.b32.xlu1 %v1402_v3, %s1358_s29  ;;  %v31_v50 = vpop.permute.xlu1 %30 }
  0x86   :  { %1285 = vset.pattern.permute.xlu1 %v1359_v53  ;;  %v77_v63 = vpop.permute.xlu0 %76 }
  0x89   :  { %1007 = vrot.lane.b32.xlu1 %v1409_v5, %s1358_s29  ;;  %v33_v56 = vpop.permute.xlu1 %32 }
  0x8a   :  { %v35_v59 = vsel %vm34_vm4, %v31_v50, %v33_v56  ;;  %v36_v60 = vsel %vm34_vm4, %v33_v56, %v31_v50  ;;  %vm768_vm4 = vmand %vm1678_vm15, %vm1480_vm1 }
  0x8b   :  { %v43_v1 = vsel %vm41_vm5, %v36_v60, 0.0  ;;  %v44_v4 = vsel %vm42_vm6, %v35_v59, 0.0  ;;  %v133_v29 = vpop.permute.xlu0 %132  ;;  %vm1012_vm6 = vmand %vm1678_vm15, %vm1567_vm8 }
  0x8c   :  { %v54_v8 = vrot.slane %v43_v1, %v1506_v54  ;;  %v58_v9 = vrot.slane %v44_v4, %v1506_v54  ;;  %v66_v10 = vrot.slane %v43_v1, %v1508_v55  ;;  %v70_v11 = vrot.slane %v44_v4, %v1508_v55 }
  0x8d   :  { %v82_v12 = vrot.slane %v43_v1, %v1511_v57  ;;  %v86_v13 = vrot.slane %v44_v4, %v1511_v57  ;;  %v94_v14 = vrot.slane %v43_v1, %v1513_v58  ;;  %v98_v15 = vrot.slane %v44_v4, %v1513_v58  ;;  %1101 = vperm.xlu1 %1285, %v1394_v0   ;;  %v170_v16 = vpop.permute.xlu1 %169 }
  0x8e   :  { %v59_v17 = vmul.f32 %v54_v8, %v49_v49  ;;  %v60_v18 = vmul.f32 %v58_v9, %v49_v49  ;;  %v71_v19 = vmul.f32 %v66_v10, %v49_v49  ;;  %v72_v20 = vmul.f32 %v70_v11, %v49_v49 }
  0x8f   :  { %v87_v21 = vmul.f32 %v82_v12, %v77_v63  ;;  %v88_v22 = vmul.f32 %v86_v13, %v77_v63  ;;  %v99_v23 = vmul.f32 %v94_v14, %v77_v63  ;;  %v100_v24 = vmul.f32 %v98_v15, %v77_v63  ;;  %v160_v63 = vpop.permute.xlu0 %159 }
  0x90   :  { %v110_v26 = vrot.slane %v43_v1, %v1515_v61  ;;  %v114_v27 = vrot.slane %v44_v4, %v1515_v61  ;;  %v122_v28 = vrot.slane %v43_v1, %v1517_v62  ;;  %v126_v0 = vrot.slane %v44_v4, %v1517_v62 }
  0x91   :  { %v89_v30 = vadd.f32 %v87_v21, %v59_v17  ;;  %v90_v31 = vadd.f32 %v88_v22, %v60_v18  ;;  %v101_v32 = vadd.f32 %v99_v23, %v71_v19  ;;  %v102_v33 = vadd.f32 %v100_v24, %v72_v20  ;;  %1286 = vset.pattern.permute.xlu1 %v1317_v2 }
  0x92   :  { %v115_v34 = vmul.f32 %v110_v26, %v1467_v43  ;;  %v116_v35 = vmul.f32 %v114_v27, %v1467_v43  ;;  %v127_v36 = vmul.f32 %v122_v28, %v1467_v43  ;;  %v128_v37 = vmul.f32 %v126_v0, %v1467_v43  ;;  %v198_v40 = vpop.permute.xlu1 %197  ;;  %1133 = vperm.xlu1 %1286, %v1128_v25  }
  0x93   :  { %v138_v48 = vrot.slane %v43_v1, %v1519_v6  ;;  %v142_v49 = vrot.slane %v44_v4, %v1519_v6  ;;  %v150_v50 = vrot.slane %v43_v1, %v1521_v7  ;;  %v154_v53 = vrot.slane %v44_v4, %v1521_v7 }
  0x94   :  { %v117_v56 = vadd.f32 %v115_v34, %v89_v30  ;;  %v118_v2 = vadd.f32 %v116_v35, %v90_v31  ;;  %v129_v59 = vadd.f32 %v127_v36, %v101_v32  ;;  %v130_v60 = vadd.f32 %v128_v37, %v102_v33 }
  0x95   :  { %v143_v8 = vmul.f32 %v138_v48, %v133_v29  ;;  %v144_v9 = vmul.f32 %v142_v49, %v133_v29  ;;  %v155_v10 = vmul.f32 %v150_v50, %v133_v29  ;;  %v156_v11 = vmul.f32 %v154_v53, %v133_v29  ;;  %v226_v49 = vpop.permute.xlu0 %225 }
  0x96   :  { %v162_v43 = vpop.permute.xlu1 %161 }
  0x97   :  { %v145_v12 = vadd.f32 %v143_v8, %v117_v56  ;;  %v146_v13 = vadd.f32 %v144_v9, %v118_v2  ;;  %v164_v14 = vsel %vm163_vm7, %v160_v63, %v162_v43  ;;  %v165_v15 = vsel %vm163_vm7, %v162_v43, %v160_v63 }
  0x98   :  { %v157_v17 = vadd.f32 %v155_v10, %v129_v59  ;;  %v158_v1 = vadd.f32 %v156_v11, %v130_v60  ;;  %v166_v4 = vsel %vm1474_vm0, %v165_v15, 0.0  ;;  %v167_v18 = vsel %vm1487_vm2, %v164_v14, 0.0 }
  0x99   :  { %v175_v19 = vrot.slane %v166_v4, %v1506_v54  ;;  %v179_v20 = vrot.slane %v167_v18, %v1506_v54  ;;  %v187_v21 = vrot.slane %v166_v4, %v1508_v55  ;;  %v191_v22 = vrot.slane %v167_v18, %v1508_v55  ;;  %v323_v46 = vpop.permute.xlu0 %322 }
  0x9a   :  { %v254_v23 = vpop.permute.xlu1 %253  ;;  %v203_v24 = vrot.slane %v166_v4, %v1511_v57  ;;  %v207_v25 = vrot.slane %v167_v18, %v1511_v57  ;;  %v215_v26 = vrot.slane %v166_v4, %v1513_v58  ;;  %v219_v27 = vrot.slane %v167_v18, %v1513_v58 }
  0x9b   :  { %v180_v28 = vmul.f32 %v175_v19, %v170_v16  ;;  %v181_v0 = vmul.f32 %v179_v20, %v170_v16  ;;  %v192_v29 = vmul.f32 %v187_v21, %v170_v16  ;;  %v193_v30 = vmul.f32 %v191_v22, %v170_v16 }
  0x9c   :  { %v208_v31 = vmul.f32 %v203_v24, %v198_v40  ;;  %v209_v32 = vmul.f32 %v207_v25, %v198_v40  ;;  %v220_v33 = vmul.f32 %v215_v26, %v198_v40  ;;  %v221_v34 = vmul.f32 %v219_v27, %v198_v40 }
  0x9d   :  { %v182_v35 = vadd.f32 %v180_v28, %v145_v12  ;;  %v183_v36 = vadd.f32 %v181_v0, %v146_v13  ;;  %v194_v37 = vadd.f32 %v192_v29, %v157_v17  ;;  %v195_v48 = vadd.f32 %v193_v30, %v158_v1 }
  0x9e   :  { %v231_v50 = vrot.slane %v166_v4, %v1515_v61  ;;  %v235_v53 = vrot.slane %v167_v18, %v1515_v61  ;;  %v243_v56 = vrot.slane %v166_v4, %v1517_v62  ;;  %v247_v2 = vrot.slane %v167_v18, %v1517_v62 }
  0x9f   :  { %v295_v59 = vpop.permute.xlu1 %294  ;;  %v210_v60 = vadd.f32 %v208_v31, %v182_v35  ;;  %v211_v16 = vadd.f32 %v209_v32, %v183_v36  ;;  %v222_v63 = vadd.f32 %v220_v33, %v194_v37  ;;  %v223_v8 = vadd.f32 %v221_v34, %v195_v48 }
  0xa0   :  { %v236_v43 = vmul.f32 %v231_v50, %v226_v49  ;;  %v237_v10 = vmul.f32 %v235_v53, %v226_v49  ;;  %v259_v11 = vrot.slane %v166_v4, %v1519_v6  ;;  %v263_v12 = vrot.slane %v167_v18, %v1519_v6 }
  0xa1   :  { %v248_v13 = vmul.f32 %v243_v56, %v226_v49  ;;  %v249_v14 = vmul.f32 %v247_v2, %v226_v49  ;;  %v271_v15 = vrot.slane %v166_v4, %v1521_v7  ;;  %v275_v41 = vrot.slane %v167_v18, %v1521_v7 }
  0xa2   :  { %v238_v1 = vadd.f32 %v236_v43, %v210_v60  ;;  %v239_v19 = vadd.f32 %v237_v10, %v211_v16  ;;  %v264_v21 = vmul.f32 %v259_v11, %v254_v23  ;;  %v265_v22 = vmul.f32 %v263_v12, %v254_v23  ;;  %v351_v12 = vpop.permute.xlu0 %350 }
  0xa3   :  { %v281_v17 = vpop.permute.xlu1 %280  ;;  %v250_v20 = vadd.f32 %v248_v13, %v222_v63  ;;  %v251_v44 = vadd.f32 %v249_v14, %v223_v8  ;;  %v276_v4 = vmul.f32 %v271_v15, %v254_v23  ;;  %v277_v18 = vmul.f32 %v275_v41, %v254_v23 }
  0xa4   :  { %v266_v25 = vadd.f32 %v264_v21, %v238_v1  ;;  %v267_v26 = vadd.f32 %v265_v22, %v239_v19  ;;  %vm1684_vm0 = vcmp.lt.s32.totalorder %v29_v45, 15  ;;  %vm763_vm2 = vcmp.lt.s32.totalorder %v1459_v38, 113 }
  0xa5   :  { %v278_v0 = vadd.f32 %v276_v4, %v250_v20  ;;  %v279_v29 = vadd.f32 %v277_v18, %v251_v44  ;;  %vm769_vm5 = vmand %vm1684_vm0, %vm1493_vm3 }
  0xa6   :  { %vm1013_vm7 = vmand %vm1684_vm0, %vm1573_vm9 }
  0xa7   :  { %v283_v24 = vpop.permute.xlu1 %282 }
  0xa8   :  { %v285_v27 = vsel %vm284_vm10, %v281_v17, %v283_v24  ;;  %v286_v28 = vsel %vm284_vm10, %v283_v24, %v281_v17  ;;  %vm1187_vm10 = vcmask 1040384  }
  0xa9   :  { %v291_v30 = vsel %vm289_vm11, %v286_v28, 0.0  ;;  %v292_v31 = vsel %vm290_vm12, %v285_v27, 0.0  ;;  %vm1189_vm11 = vcmask 254976  }
  0xaa   :  { %v300_v32 = vrot.slane %v291_v30, %v1506_v54  ;;  %v304_v33 = vrot.slane %v292_v31, %v1506_v54  ;;  %v312_v34 = vrot.slane %v291_v30, %v1508_v55  ;;  %v316_v51 = vrot.slane %v292_v31, %v1508_v55 }
  0xab   :  { %v328_v23 = vrot.slane %v291_v30, %v1511_v57  ;;  %v332_v35 = vrot.slane %v292_v31, %v1511_v57  ;;  %v340_v36 = vrot.slane %v291_v30, %v1513_v58  ;;  %v344_v37 = vrot.slane %v292_v31, %v1513_v58  ;;  %v379_v48 = vpop.permute.xlu1 %378 }
  0xac   :  { %v305_v49 = vmul.f32 %v300_v32, %v295_v59  ;;  %v306_v50 = vmul.f32 %v304_v33, %v295_v59  ;;  %v317_v53 = vmul.f32 %v312_v34, %v295_v59  ;;  %v318_v56 = vmul.f32 %v316_v51, %v295_v59 }
  0xad   :  { %v333_v8 = vmul.f32 %v328_v23, %v323_v46  ;;  %v334_v43 = vmul.f32 %v332_v35, %v323_v46  ;;  %v356_v10 = vrot.slane %v291_v30, %v1515_v61  ;;  %v360_v11 = vrot.slane %v292_v31, %v1515_v61 }
  0xae   :  { %v307_v2 = vadd.f32 %v305_v49, %v266_v25  ;;  %v308_v60 = vadd.f32 %v306_v50, %v267_v26  ;;  %v319_v16 = vadd.f32 %v317_v53, %v278_v0  ;;  %v320_v63 = vadd.f32 %v318_v56, %v279_v29 }
  0xaf   :  { %v345_v13 = vmul.f32 %v340_v36, %v323_v46  ;;  %v346_v14 = vmul.f32 %v344_v37, %v323_v46  ;;  %v368_v15 = vrot.slane %v291_v30, %v1517_v62  ;;  %v372_v41 = vrot.slane %v292_v31, %v1517_v62  ;;  %v444_v37 = vpop.permute.xlu0 %443 }
  0xb0   :  { %v416_v17 = vpop.permute.xlu1 %415  ;;  %v335_v1 = vadd.f32 %v333_v8, %v307_v2  ;;  %v336_v59 = vadd.f32 %v334_v43, %v308_v60  ;;  %v361_v44 = vmul.f32 %v356_v10, %v351_v12  ;;  %v362_v21 = vmul.f32 %v360_v11, %v351_v12 }
  0xb1   :  { %v347_v19 = vadd.f32 %v345_v13, %v319_v16  ;;  %v348_v20 = vadd.f32 %v346_v14, %v320_v63  ;;  %v384_v22 = vrot.slane %v291_v30, %v1519_v6  ;;  %v388_v4 = vrot.slane %v292_v31, %v1519_v6 }
  0xb2   :  { %v373_v18 = vmul.f32 %v368_v15, %v351_v12  ;;  %v374_v24 = vmul.f32 %v372_v41, %v351_v12  ;;  %v396_v25 = vrot.slane %v291_v30, %v1521_v7  ;;  %v400_v26 = vrot.slane %v292_v31, %v1521_v7 }
  0xb3   :  { %v363_v28 = vadd.f32 %v361_v44, %v335_v1  ;;  %v364_v0 = vadd.f32 %v362_v21, %v336_v59  ;;  %v389_v32 = vmul.f32 %v384_v22, %v379_v48  ;;  %v390_v33 = vmul.f32 %v388_v4, %v379_v48 }
  0xb4   :  { %v406_v27 = vpop.permute.xlu1 %405  ;;  %v375_v29 = vadd.f32 %v373_v18, %v347_v19  ;;  %v376_v46 = vadd.f32 %v374_v24, %v348_v20  ;;  %v401_v34 = vmul.f32 %v396_v25, %v379_v48  ;;  %v402_v51 = vmul.f32 %v400_v26, %v379_v48  ;;  %v472_v20 = vpop.permute.xlu0 %471 }
  0xb5   :  { %v391_v35 = vadd.f32 %v389_v32, %v363_v28  ;;  %v392_v36 = vadd.f32 %v390_v33, %v364_v0 }
  0xb6   :  { %v403_v30 = vadd.f32 %v401_v34, %v375_v29  ;;  %v404_v53 = vadd.f32 %v402_v51, %v376_v46 }
  0xb8   :  { %v408_v23 = vpop.permute.xlu1 %407 }
  0xb9   :  { %v410_v49 = vsel %vm409_vm13, %v406_v27, %v408_v23  ;;  %v411_v50 = vsel %vm409_vm13, %v408_v23, %v406_v27 }
  0xba   :  { %v412_v31 = vsel %vm1480_vm1, %v411_v50, 0.0  ;;  %v413_v56 = vsel %vm1493_vm3, %v410_v49, 0.0  ;;  %vm888_vm1 = vcmp.lt.s32.totalorder %v1459_v38, 112  ;;  %vm1009_vm3 = vcmp.lt.s32.totalorder %v1459_v38, 111 }
  0xbb   :  { %v421_v2 = vrot.slane %v412_v31, %v1506_v54  ;;  %v425_v60 = vrot.slane %v413_v56, %v1506_v54  ;;  %v433_v48 = vrot.slane %v412_v31, %v1508_v55  ;;  %v437_v16 = vrot.slane %v413_v56, %v1508_v55 }
  0xbc   :  { %v449_v63 = vrot.slane %v412_v31, %v1511_v57  ;;  %v453_v8 = vrot.slane %v413_v56, %v1511_v57  ;;  %v461_v43 = vrot.slane %v412_v31, %v1513_v58  ;;  %v465_v10 = vrot.slane %v413_v56, %v1513_v58  ;;  %v500_v11 = vpop.permute.xlu1 %499 }
  0xbd   :  { %v426_v12 = vmul.f32 %v421_v2, %v416_v17  ;;  %v427_v13 = vmul.f32 %v425_v60, %v416_v17  ;;  %v438_v14 = vmul.f32 %v433_v48, %v416_v17  ;;  %v439_v15 = vmul.f32 %v437_v16, %v416_v17 }
  0xbe   :  { %v454_v41 = vmul.f32 %v449_v63, %v444_v37  ;;  %v455_v1 = vmul.f32 %v453_v8, %v444_v37  ;;  %v466_v59 = vmul.f32 %v461_v43, %v444_v37  ;;  %v467_v19 = vmul.f32 %v465_v10, %v444_v37 }
  0xbf   :  { %v428_v44 = vadd.f32 %v426_v12, %v391_v35  ;;  %v429_v21 = vadd.f32 %v427_v13, %v392_v36  ;;  %v440_v22 = vadd.f32 %v438_v14, %v403_v30  ;;  %v441_v4 = vadd.f32 %v439_v15, %v404_v53  ;;  %v556_v13 = vpop.permute.xlu0 %555 }
  0xc0   :  { %v477_v18 = vrot.slane %v412_v31, %v1515_v61  ;;  %v481_v24 = vrot.slane %v413_v56, %v1515_v61  ;;  %v489_v25 = vrot.slane %v412_v31, %v1517_v62  ;;  %v493_v26 = vrot.slane %v413_v56, %v1517_v62 }
  0xc1   :  { %v456_v27 = vadd.f32 %v454_v41, %v428_v44  ;;  %v457_v28 = vadd.f32 %v455_v1, %v429_v21  ;;  %v468_v17 = vadd.f32 %v466_v59, %v440_v22  ;;  %v469_v0 = vadd.f32 %v467_v19, %v441_v4  ;;  %v528_v29 = vpop.permute.xlu1 %527 }
  0xc2   :  { %v482_v46 = vmul.f32 %v477_v18, %v472_v20  ;;  %v483_v32 = vmul.f32 %v481_v24, %v472_v20  ;;  %v494_v33 = vmul.f32 %v489_v25, %v472_v20  ;;  %v495_v34 = vmul.f32 %v493_v26, %v472_v20 }
  0xc3   :  { %v505_v51 = vrot.slane %v412_v31, %v1519_v6  ;;  %v509_v23 = vrot.slane %v413_v56, %v1519_v6  ;;  %v517_v35 = vrot.slane %v412_v31, %v1521_v7  ;;  %v521_v36 = vrot.slane %v413_v56, %v1521_v7  ;;  %v649_v25 = vpop.permute.xlu0 %648 }
  0xc4   :  { %v484_v37 = vadd.f32 %v482_v46, %v456_v27  ;;  %v485_v49 = vadd.f32 %v483_v32, %v457_v28  ;;  %v496_v50 = vadd.f32 %v494_v33, %v468_v17  ;;  %v497_v30 = vadd.f32 %v495_v34, %v469_v0 }
  0xc5   :  { %v510_v53 = vmul.f32 %v505_v51, %v500_v11  ;;  %v511_v2 = vmul.f32 %v509_v23, %v500_v11  ;;  %v537_v60 = vrot.slane %v1409_v5, %v1506_v54  ;;  %v533_v48 = vrot.slane %v1402_v3, %v1506_v54 }
  0xc6   :  { %v584_v16 = vpop.permute.xlu1 %583  ;;  %v522_v63 = vmul.f32 %v517_v35, %v500_v11  ;;  %v523_v8 = vmul.f32 %v521_v36, %v500_v11  ;;  %v549_v31 = vrot.slane %v1409_v5, %v1508_v55  ;;  %v545_v56 = vrot.slane %v1402_v3, %v1508_v55 }
  0xc7   :  { %v512_v43 = vadd.f32 %v510_v53, %v484_v37  ;;  %v513_v10 = vadd.f32 %v511_v2, %v485_v49  ;;  %v565_v12 = vrot.slane %v1409_v5, %v1511_v57  ;;  %v561_v14 = vrot.slane %v1402_v3, %v1511_v57  ;;  %v641_v2 = vpop.permute.xlu0 %640 }
  0xc8   :  { %v524_v15 = vadd.f32 %v522_v63, %v496_v50  ;;  %v525_v41 = vadd.f32 %v523_v8, %v497_v30  ;;  %v577_v11 = vrot.slane %v1409_v5, %v1513_v58  ;;  %v573_v1 = vrot.slane %v1402_v3, %v1513_v58 }
  0xc9   :  { %v538_v59 = vmul.f32 %v533_v48, %v528_v29  ;;  %v539_v19 = vmul.f32 %v537_v60, %v528_v29  ;;  %v550_v20 = vmul.f32 %v545_v56, %v528_v29  ;;  %v551_v44 = vmul.f32 %v549_v31, %v528_v29 }
  0xca   :  { %v566_v18 = vmul.f32 %v561_v14, %v556_v13  ;;  %v567_v24 = vmul.f32 %v565_v12, %v556_v13  ;;  %v578_v28 = vmul.f32 %v573_v1, %v556_v13  ;;  %v579_v17 = vmul.f32 %v577_v11, %v556_v13 }
  0xcb   :  { %v612_v21 = vpop.permute.xlu1 %611  ;;  %v540_v22 = vadd.f32 %v538_v59, %v512_v43  ;;  %v541_v4 = vadd.f32 %v539_v19, %v513_v10  ;;  %v552_v26 = vadd.f32 %v550_v20, %v524_v15  ;;  %v553_v27 = vadd.f32 %v551_v44, %v525_v41 }
  0xcc   :  { %v593_v0 = vrot.slane %v1409_v5, %v1515_v61  ;;  %v589_v46 = vrot.slane %v1402_v3, %v1515_v61  ;;  %v605_v32 = vrot.slane %v1409_v5, %v1517_v62  ;;  %v601_v29 = vrot.slane %v1402_v3, %v1517_v62 }
  0xcd   :  { %v621_v33 = vrot.slane %v1409_v5, %v1519_v6  ;;  %v617_v34 = vrot.slane %v1402_v3, %v1519_v6  ;;  %v568_v51 = vadd.f32 %v566_v18, %v540_v22  ;;  %v569_v23 = vadd.f32 %v567_v24, %v541_v4 }
  0xce   :  { %v633_v35 = vrot.slane %v1409_v5, %v1521_v7  ;;  %v629_v36 = vrot.slane %v1402_v3, %v1521_v7  ;;  %v580_v49 = vadd.f32 %v578_v28, %v552_v26  ;;  %v581_v50 = vadd.f32 %v579_v17, %v553_v27 }
  0xcf   :  { %v594_v30 = vmul.f32 %v589_v46, %v584_v16  ;;  %v595_v53 = vmul.f32 %v593_v0, %v584_v16  ;;  %v606_v60 = vmul.f32 %v601_v29, %v584_v16  ;;  %v607_v48 = vmul.f32 %v605_v32, %v584_v16 }
  0xd0   :  { %v677_v37 = vpop.permute.xlu1 %676  ;;  %v622_v63 = vmul.f32 %v617_v34, %v612_v21  ;;  %v623_v8 = vmul.f32 %v621_v33, %v612_v21  ;;  %v634_v43 = vmul.f32 %v629_v36, %v612_v21  ;;  %v635_v10 = vmul.f32 %v633_v35, %v612_v21 }
  0xd1   :  { %v596_v31 = vadd.f32 %v594_v30, %v568_v51  ;;  %v597_v56 = vadd.f32 %v595_v53, %v569_v23  ;;  %v608_v12 = vadd.f32 %v606_v60, %v580_v49  ;;  %v609_v13 = vadd.f32 %v607_v48, %v581_v50  ;;  %v733_v60 = vpop.permute.xlu0 %732 }
  0xd3   :  { %v624_v20 = vadd.f32 %v622_v63, %v596_v31  ;;  %v625_v44 = vadd.f32 %v623_v8, %v597_v56  ;;  %v636_v21 = vadd.f32 %v634_v43, %v608_v12  ;;  %v637_v22 = vadd.f32 %v635_v10, %v609_v13 }
  0xd4   :  { %v639_v5 = vpop.permute.xlu1 %638 }
  0xd5   :  { %v643_v3 = vsel %vm642_vm14, %v639_v5, %v641_v2  ;;  %v644_v14 = vsel %vm642_vm14, %v641_v2, %v639_v5 }
  0xd6   :  { %v645_v15 = vsel %vm1567_vm8, %v643_v3, 0.0  ;;  %v646_v41 = vsel %vm1573_vm9, %v644_v14, 0.0  ;;  %vm1144_vm8 = vcmask 261120   ;;  %vm1154_vm9 = vcmask 253952  }
  0xd7   :  { %v654_v11 = vrot.slane %v645_v15, %v1506_v54  ;;  %v658_v16 = vrot.slane %v646_v41, %v1506_v54  ;;  %v666_v1 = vrot.slane %v645_v15, %v1508_v55  ;;  %v670_v59 = vrot.slane %v646_v41, %v1508_v55 }
  0xd8   :  { %v705_v19 = vpop.permute.xlu1 %704  ;;  %v682_v27 = vrot.slane %v645_v15, %v1511_v57  ;;  %v686_v28 = vrot.slane %v646_v41, %v1511_v57  ;;  %v694_v17 = vrot.slane %v645_v15, %v1513_v58  ;;  %v698_v0 = vrot.slane %v646_v41, %v1513_v58 }
  0xd9   :  { %v659_v4 = vmul.f32 %v654_v11, %v649_v25  ;;  %v660_v18 = vmul.f32 %v658_v16, %v649_v25  ;;  %v671_v24 = vmul.f32 %v666_v1, %v649_v25  ;;  %v672_v26 = vmul.f32 %v670_v59, %v649_v25  ;;  %v760_v16 = vpop.permute.xlu0 %759 }
  0xda   :  { %v710_v29 = vrot.slane %v645_v15, %v1515_v61  ;;  %v714_v33 = vrot.slane %v646_v41, %v1515_v61  ;;  %v687_v34 = vmul.f32 %v682_v27, %v677_v37  ;;  %v688_v51 = vmul.f32 %v686_v28, %v677_v37 }
  0xdb   :  { %v662_v46 = vadd.f32 %v660_v18, %v625_v44  ;;  %v674_v32 = vadd.f32 %v672_v26, %v637_v22  ;;  %v699_v23 = vmul.f32 %v694_v17, %v677_v37  ;;  %v700_v35 = vmul.f32 %v698_v0, %v677_v37 }
  0xdc   :  { %v722_v25 = vrot.slane %v645_v15, %v1517_v62  ;;  %v726_v49 = vrot.slane %v646_v41, %v1517_v62  ;;  %v661_v50 = vadd.f32 %v659_v4, %v624_v20  ;;  %v673_v30 = vadd.f32 %v671_v24, %v636_v21 }
  0xdd   :  { %v774_v36 = vpop.permute.xlu1 %773  ;;  %v690_v53 = vadd.f32 %v688_v51, %v662_v46  ;;  %v702_v48 = vadd.f32 %v700_v35, %v674_v32  ;;  %v738_v31 = vrot.slane %v645_v15, %v1519_v6  ;;  %v742_v56 = vrot.slane %v646_v41, %v1519_v6 }
  0xde   :  { %v689_v63 = vadd.f32 %v687_v34, %v661_v50  ;;  %v701_v8 = vadd.f32 %v699_v23, %v673_v30  ;;  %v715_v43 = vmul.f32 %v710_v29, %v705_v19  ;;  %v716_v10 = vmul.f32 %v714_v33, %v705_v19 }
  0xdf   :  { %v750_v42 = vrot.slane %v645_v15, %v1521_v7  ;;  %v754_v5 = vrot.slane %v646_v41, %v1521_v7  ;;  %v727_v12 = vmul.f32 %v722_v25, %v705_v19  ;;  %v728_v13 = vmul.f32 %v726_v49, %v705_v19 }
  0xe0   :  { %v717_v14 = vadd.f32 %v715_v43, %v689_v63  ;;  %v718_v11 = vadd.f32 %v716_v10, %v690_v53  ;;  %v743_v1 = vmul.f32 %v738_v31, %v733_v60  ;;  %v744_v59 = vmul.f32 %v742_v56, %v733_v60  ;;  %v830_v63 = vpop.permute.xlu0 %829 }
  0xe1   :  { %v729_v39 = vadd.f32 %v727_v12, %v701_v8  ;;  %v730_v45 = vadd.f32 %v728_v13, %v702_v48  ;;  %v755_v15 = vmul.f32 %v750_v42, %v733_v60  ;;  %v756_v41 = vmul.f32 %v754_v5, %v733_v60 }
  0xe2   :  { %v802_v3 = vpop.permute.xlu1 %801  ;;  %v745_v20 = vadd.f32 %v743_v1, %v717_v14  ;;  %v746_v44 = vadd.f32 %v744_v59, %v718_v11 }
  0xe3   :  { %v757_v4 = vadd.f32 %v755_v15, %v729_v39  ;;  %v758_v18 = vadd.f32 %v756_v41, %v730_v45 }
  0xe6   :  { %v762_v19 = vpop.permute.xlu1 %761 }
  0xe7   :  { %v764_v21 = vsel %vm763_vm2, %v760_v16, %v762_v19  ;;  %v765_v22 = vsel %vm763_vm2, %v762_v19, %v760_v16 }
  0xe8   :  { %v770_v47 = vsel %vm768_vm4, %v764_v21, 0.0  ;;  %v771_v24 = vsel %vm769_vm5, %v765_v22, 0.0 }
  0xe9   :  { %v779_v26 = vrot.slane %v770_v47, %v1506_v54  ;;  %v783_v27 = vrot.slane %v771_v24, %v1506_v54  ;;  %v791_v52 = vrot.slane %v770_v47, %v1508_v55  ;;  %v795_v28 = vrot.slane %v771_v24, %v1508_v55 }
  0xea   :  { %v807_v17 = vrot.slane %v770_v47, %v1511_v57  ;;  %v811_v0 = vrot.slane %v771_v24, %v1511_v57  ;;  %v819_v46 = vrot.slane %v770_v47, %v1513_v58  ;;  %v823_v32 = vrot.slane %v771_v24, %v1513_v58  ;;  %v858_v29 = vpop.permute.xlu1 %857 }
  0xeb   :  { %v784_v33 = vmul.f32 %v779_v26, %v774_v36  ;;  %v785_v34 = vmul.f32 %v783_v27, %v774_v36  ;;  %v796_v51 = vmul.f32 %v791_v52, %v774_v36  ;;  %v797_v23 = vmul.f32 %v795_v28, %v774_v36 }
  0xec   :  { %v812_v30 = vmul.f32 %v807_v17, %v802_v3  ;;  %v813_v53 = vmul.f32 %v811_v0, %v802_v3  ;;  %v835_v60 = vrot.slane %v770_v47, %v1515_v61  ;;  %v839_v48 = vrot.slane %v771_v24, %v1515_v61 }
  0xed   :  { %v786_v35 = vadd.f32 %v784_v33, %v745_v20  ;;  %v787_v25 = vadd.f32 %v785_v34, %v746_v44  ;;  %v798_v49 = vadd.f32 %v796_v51, %v757_v4  ;;  %v799_v50 = vadd.f32 %v797_v23, %v758_v18 }
  0xee   :  { %v824_v8 = vmul.f32 %v819_v46, %v802_v3  ;;  %v825_v31 = vmul.f32 %v823_v32, %v802_v3  ;;  %v847_v56 = vrot.slane %v770_v47, %v1517_v62  ;;  %v851_v43 = vrot.slane %v771_v24, %v1517_v62  ;;  %v923_v46 = vpop.permute.xlu0 %922 }
  0xef   :  { %v895_v10 = vpop.permute.xlu1 %894  ;;  %v814_v42 = vadd.f32 %v812_v30, %v786_v35  ;;  %v815_v36 = vadd.f32 %v813_v53, %v787_v25  ;;  %v840_v13 = vmul.f32 %v835_v60, %v830_v63  ;;  %v841_v14 = vmul.f32 %v839_v48, %v830_v63 }
  0xf0   :  { %v826_v5 = vadd.f32 %v824_v8, %v798_v49  ;;  %v827_v12 = vadd.f32 %v825_v31, %v799_v50  ;;  %v863_v11 = vrot.slane %v770_v47, %v1519_v6  ;;  %v867_v39 = vrot.slane %v771_v24, %v1519_v6 }
  0xf1   :  { %v852_v45 = vmul.f32 %v847_v56, %v830_v63  ;;  %v853_v16 = vmul.f32 %v851_v43, %v830_v63  ;;  %v875_v1 = vrot.slane %v770_v47, %v1521_v7  ;;  %v879_v3 = vrot.slane %v771_v24, %v1521_v7 }
  0xf2   :  { %v842_v15 = vadd.f32 %v840_v13, %v814_v42  ;;  %v843_v41 = vadd.f32 %v841_v14, %v815_v36  ;;  %v868_v44 = vmul.f32 %v863_v11, %v858_v29  ;;  %v869_v21 = vmul.f32 %v867_v39, %v858_v29 }
  0xf3   :  { %v885_v59 = vpop.permute.xlu1 %884  ;;  %v854_v19 = vadd.f32 %v852_v45, %v826_v5  ;;  %v855_v20 = vadd.f32 %v853_v16, %v827_v12  ;;  %v880_v22 = vmul.f32 %v875_v1, %v858_v29  ;;  %v881_v4 = vmul.f32 %v879_v3, %v858_v29  ;;  %v951_v5 = vpop.permute.xlu0 %950 }
  0xf4   :  { %v870_v26 = vadd.f32 %v868_v44, %v842_v15  ;;  %v871_v27 = vadd.f32 %v869_v21, %v843_v41 }
  0xf5   :  { %v882_v17 = vadd.f32 %v880_v22, %v854_v19  ;;  %v883_v47 = vadd.f32 %v881_v4, %v855_v20 }
  0xf7   :  { %v887_v18 = vpop.permute.xlu1 %886 }
  0xf8   :  { %v889_v52 = vsel %vm888_vm1, %v885_v59, %v887_v18  ;;  %v890_v28 = vsel %vm888_vm1, %v887_v18, %v885_v59 }
  0xf9   :  { %v891_v24 = vsel %vm1678_vm15, %v889_v52, 0.0  ;;  %v892_v0 = vsel %vm1684_vm0, %v890_v28, 0.0 }
  0xfa   :  { %v900_v32 = vrot.slane %v891_v24, %v1506_v54  ;;  %v904_v33 = vrot.slane %v892_v0, %v1506_v54  ;;  %v912_v29 = vrot.slane %v891_v24, %v1508_v55  ;;  %v916_v34 = vrot.slane %v892_v0, %v1508_v55 }
  0xfb   :  { %v928_v51 = vrot.slane %v891_v24, %v1511_v57  ;;  %v932_v23 = vrot.slane %v892_v0, %v1511_v57  ;;  %v940_v35 = vrot.slane %v891_v24, %v1513_v58  ;;  %v944_v25 = vrot.slane %v892_v0, %v1513_v58  ;;  %v979_v49 = vpop.permute.xlu1 %978 }
  0xfc   :  { %v905_v50 = vmul.f32 %v900_v32, %v895_v10  ;;  %v906_v30 = vmul.f32 %v904_v33, %v895_v10  ;;  %v917_v53 = vmul.f32 %v912_v29, %v895_v10  ;;  %v918_v60 = vmul.f32 %v916_v34, %v895_v10  ;;  %v1046_v32 = vpop.permute.xlu0 %1045 }
  0xfd   :  { %v933_v56 = vmul.f32 %v928_v51, %v923_v46  ;;  %v934_v43 = vmul.f32 %v932_v23, %v923_v46  ;;  %v956_v42 = vrot.slane %v891_v24, %v1515_v61  ;;  %v960_v36 = vrot.slane %v892_v0, %v1515_v61 }
  0xfe   :  { %v907_v48 = vadd.f32 %v905_v50, %v870_v26  ;;  %v908_v63 = vadd.f32 %v906_v30, %v871_v27  ;;  %v919_v8 = vadd.f32 %v917_v53, %v882_v17  ;;  %v920_v31 = vadd.f32 %v918_v60, %v883_v47 }
  0xff   :  { %v945_v12 = vmul.f32 %v940_v35, %v923_v46  ;;  %v946_v13 = vmul.f32 %v944_v25, %v923_v46  ;;  %v968_v14 = vrot.slane %v891_v24, %v1517_v62  ;;  %v972_v11 = vrot.slane %v892_v0, %v1517_v62 }
 0x100   :  { %v1018_v39 = vpop.permute.xlu1 %1017  ;;  %v935_v45 = vadd.f32 %v933_v56, %v907_v48  ;;  %v936_v10 = vadd.f32 %v934_v43, %v908_v63  ;;  %v961_v3 = vmul.f32 %v956_v42, %v951_v5  ;;  %v962_v59 = vmul.f32 %v960_v36, %v951_v5  ;;  %v1074_v56 = vpop.permute.xlu0 %1073 }
 0x101   :  { %v947_v16 = vadd.f32 %v945_v12, %v919_v8  ;;  %v948_v1 = vadd.f32 %v946_v13, %v920_v31  ;;  %v984_v15 = vrot.slane %v891_v24, %v1519_v6  ;;  %v988_v41 = vrot.slane %v892_v0, %v1519_v6 }
 0x102   :  { %v973_v19 = vmul.f32 %v968_v14, %v951_v5  ;;  %v974_v20 = vmul.f32 %v972_v11, %v951_v5  ;;  %v996_v44 = vrot.slane %v891_v24, %v1521_v7  ;;  %v1000_v21 = vrot.slane %v892_v0, %v1521_v7 }
 0x103   :  { %v963_v4 = vadd.f32 %v961_v3, %v935_v45  ;;  %v964_v18 = vadd.f32 %v962_v59, %v936_v10  ;;  %v989_v52 = vmul.f32 %v984_v15, %v979_v49  ;;  %v990_v28 = vmul.f32 %v988_v41, %v979_v49 }
 0x104   :  { %v1006_v22 = vpop.permute.xlu1 %1005  ;;  %v975_v26 = vadd.f32 %v973_v19, %v947_v16  ;;  %v976_v27 = vadd.f32 %v974_v20, %v948_v1  ;;  %v1001_v17 = vmul.f32 %v996_v44, %v979_v49  ;;  %v1002_v47 = vmul.f32 %v1000_v21, %v979_v49 }
 0x105   :  { %v991_v0 = vadd.f32 %v989_v52, %v963_v4  ;;  %v992_v46 = vadd.f32 %v990_v28, %v964_v18 }
 0x106   :  { %v1003_v29 = vadd.f32 %v1001_v17, %v975_v26  ;;  %v1004_v40 = vadd.f32 %v1002_v47, %v976_v27 }
 0x108   :  { %v1008_v24 = vpop.permute.xlu1 %1007 }
 0x109   :  { %v1010_v33 = vsel %vm1009_vm3, %v1006_v22, %v1008_v24  ;;  %v1011_v38 = vsel %vm1009_vm3, %v1008_v24, %v1006_v22 }
 0x10a   :  { %v1014_v34 = vsel %vm1012_vm6, %v1010_v33, 0.0  ;;  %v1015_v2 = vsel %vm1013_vm7, %v1011_v38, 0.0 }
 0x10b   :  { %v1023_v51 = vrot.slane %v1014_v34, %v1506_v54  ;;  %v1027_v23 = vrot.slane %v1015_v2, %v1506_v54  ;;  %v1035_v9 = vrot.slane %v1014_v34, %v1508_v55  ;;  %v1039_v37 = vrot.slane %v1015_v2, %v1508_v55 }
 0x10c   :  { %v1051_v35 = vrot.slane %v1014_v34, %v1511_v57  ;;  %v1055_v25 = vrot.slane %v1015_v2, %v1511_v57  ;;  %v1063_v49 = vrot.slane %v1014_v34, %v1513_v58  ;;  %v1067_v50 = vrot.slane %v1015_v2, %v1513_v58  ;;  %v1102_v3 = vpop.permute.xlu1 %1101 }
 0x10d   :  { %v1028_v30 = vmul.f32 %v1023_v51, %v1018_v39  ;;  %v1029_v53 = vmul.f32 %v1027_v23, %v1018_v39  ;;  %v1040_v60 = vmul.f32 %v1035_v9, %v1018_v39  ;;  %v1041_v48 = vmul.f32 %v1039_v37, %v1018_v39 }
 0x10e   :  { %v1056_v63 = vmul.f32 %v1051_v35, %v1046_v32  ;;  %v1057_v8 = vmul.f32 %v1055_v25, %v1046_v32  ;;  %v1068_v31 = vmul.f32 %v1063_v49, %v1046_v32  ;;  %v1069_v54 = vmul.f32 %v1067_v50, %v1046_v32 }
 0x10f   :  { %v1030_v43 = vadd.f32 %v1028_v30, %v991_v0  ;;  %v1031_v42 = vadd.f32 %v1029_v53, %v992_v46  ;;  %v1042_v55 = vadd.f32 %v1040_v60, %v1003_v29  ;;  %v1043_v36 = vadd.f32 %v1041_v48, %v1004_v40  ;;  %v1129_v40 = vld [vmem:[%s1784_s3] sm:$0xff]  ;;  %s1360_s3 = smov [#allocation2]  }
 0x110   :  { %v1079_v5 = vrot.slane %v1014_v34, %v1515_v61  ;;  %v1083_v57 = vrot.slane %v1015_v2, %v1515_v61  ;;  %v1091_v12 = vrot.slane %v1014_v34, %v1517_v62  ;;  %v1095_v58 = vrot.slane %v1015_v2, %v1517_v62 }
 0x111   :  { %v1058_v13 = vadd.f32 %v1056_v63, %v1030_v43  ;;  %v1059_v14 = vadd.f32 %v1057_v8, %v1031_v42  ;;  %v1070_v11 = vadd.f32 %v1068_v31, %v1042_v55  ;;  %v1071_v39 = vadd.f32 %v1069_v54, %v1043_v36  ;;  %v1134_v26 = vpop.permute.xlu1 %1133  ;;  %v1130_v31 = vld [vmem:[%s1785_s4] sm:$0x1]  ;;  %s1197_s4 = sshll.u32 %s1360_s3, 4  ;;  %s1198_s4 = int_to_ptr.vmem [resolvable:$true] %s1197_s4 }
 0x112   :  { %v1084_v45 = vmul.f32 %v1079_v5, %v1074_v56  ;;  %v1085_v10 = vmul.f32 %v1083_v57, %v1074_v56  ;;  %v1096_v16 = vmul.f32 %v1091_v12, %v1074_v56  ;;  %v1097_v1 = vmul.f32 %v1095_v58, %v1074_v56  ;;  %s1292_s10 = scalar_lea.vmem %s1198_s4, 32  ;;  %p1297_p1 = scmp.lt.s32.totalorder %s1198_s4, %s1198_s4 }
 0x113   :  { %v1107_v59 = vrot.slane %v1014_v34, %v1519_v6  ;;  %v1111_v15 = vrot.slane %v1015_v2, %v1519_v6  ;;  %v1119_v41 = vrot.slane %v1014_v34, %v1521_v7  ;;  %v1123_v61 = vrot.slane %v1015_v2, %v1521_v7  ;;  %p1293_p0 = scmp.ne.s32.totalorder %s1198_s4, %s1292_s10  ;;  %p1298_p2 = scmp.lt.s32.totalorder %s1292_s10, %s1292_s10 }
 0x114   :  { %v1086_v19 = vadd.f32 %v1084_v45, %v1058_v13  ;;  %v1087_v20 = vadd.f32 %v1085_v10, %v1059_v14  ;;  %v1098_v62 = vadd.f32 %v1096_v16, %v1070_v11  ;;  %v1099_v44 = vadd.f32 %v1097_v1, %v1071_v39 }
 0x115   :  { %v1112_v21 = vmul.f32 %v1107_v59, %v1102_v3  ;;  %v1113_v22 = vmul.f32 %v1111_v15, %v1102_v3  ;;  %v1124_v4 = vmul.f32 %v1119_v41, %v1102_v3  ;;  %v1125_v18 = vmul.f32 %v1123_v61, %v1102_v3  ;;  %p1299_p3 = por %p1298_p2, %p1297_p1 }
 0x117   :  { %v1126_v27 = vadd.f32 %v1124_v4, %v1098_v62  ;;  %v1127_v52 = vadd.f32 %v1125_v18, %v1099_v44  ;;  %v1114_v28 = vadd.f32 %v1112_v21, %v1086_v19  ;;  %v1115_v17 = vadd.f32 %v1113_v22, %v1087_v20  ;;  %p1300_p4 = pnand %p1299_p3, %p1293_p0 }
 0x119   :  { %v1161_v47 = vadd.f32 %v1134_v26, %v1126_v27  ;;  %v1162_v24 = vadd.f32 %v1134_v26, %v1127_v52  ;;  %v1136_v6 = vadd.f32 %v1134_v26, %v1114_v28  ;;  %v1137_v0 = vadd.f32 %v1134_v26, %v1115_v17 }
 0x11b   :  { %v1163_v46 = vmax.f32 %v1161_v47, 0.0  ;;  %v1164_v32 = vmax.f32 %v1162_v24, 0.0  ;;  %v1138_v7 = vmax.f32 %v1136_v6, 0.0  ;;  %v1139_v33 = vmax.f32 %v1137_v0, 0.0 }
 0x11d   :  { %v1165_v38 = vadd.f32 %v1164_v32, %v1163_v46  ;;  %v1140_v29 = vadd.f32 %v1139_v33, %v1138_v7 }
 0x11f   :  { %1166 = vadd.xlane.f32.xlu0 %v1165_v38  ;;  %1141 = vadd.xlane.f32.xlu1 %v1140_v29 }
 0x1ac   :  { %v1167_v34 = vpop.xlane.xlu0 %1166  ;;  %v1142_v2 = vpop.xlane.xlu1 %1141 }
 0x1ad   :  { %v1168_v51 = vmul.f32 %v1167_v34, %v1129_v40  ;;  %v1143_v23 = vmul.f32 %v1142_v2, %v1129_v40 }
 0x1af   :  { %v1169_v9 = vsel %vm1144_vm8, %v1168_v51, 0.0  ;;  %v1145_v37 = vsel %vm1144_vm8, %v1143_v23, 0.0 }
 0x1b0   :  { %v1170_v35 = vrot.slane %v1169_v9, 4  ;;  %v1146_v25 = vrot.slane %v1145_v37, 4 }
 0x1b2   :  { %v1171_v49 = vadd.f32 %v1170_v35, %v1169_v9  ;;  %v1147_v50 = vadd.f32 %v1146_v25, %v1145_v37 }
 0x1b4   :  { %v1172_v30 = vrot.slane %v1171_v49, 2  ;;  %v1148_v53 = vrot.slane %v1147_v50, 2 }
 0x1b6   :  { %v1173_v60 = vadd.f32 %v1172_v30, %v1171_v49  ;;  %v1149_v48 = vadd.f32 %v1148_v53, %v1147_v50 }
 0x1b8   :  { %v1174_v63 = vrot.slane %v1173_v60, 1  ;;  %v1150_v8 = vrot.slane %v1149_v48, 1 }
 0x1ba   :  { %v1175_v54 = vadd.f32 %v1174_v63, %v1173_v60  ;;  %v1151_v56 = vadd.f32 %v1150_v8, %v1149_v48 }
 0x1bc   :  { %v1176_v43 = vadd.f32 %v1175_v54, %v1130_v31  ;;  %v1152_v42 = vadd.f32 %v1151_v56, %v1130_v31 }
 0x1be   :  { %v1177_v55 = vmul.f32 %v1176_v43, %v1176_v43  ;;  %v1153_v5 = vmul.f32 %v1152_v42, %v1152_v42 }
 0x1c0   :  { %v1178_v36 = vsel %vm1154_vm9, %v1177_v55, 0.0  ;;  %v1155_v57 = vsel %vm1154_vm9, %v1153_v5, 0.0 }
 0x1c1   :  { %1179 = vadd.xlane.f32.xlu0 %v1178_v36 }
 0x1c5   :  { %1156 = vadd.xlane.f32.xlu0 %v1155_v57 }
 0x24e   :  { %v1180_v12 = vpop.xlane.xlu0 %1179 }
 0x24f   :  { %v1181_v58 = vmax.f32 %v1180_v12, 1e-24 }
 0x251   :  { %1288 = vrsqrt.f32 %v1181_v58 }
 0x252   :  { %v1157_v13 = vpop.xlane.xlu0 %1156 }
 0x253   :  { %v1158_v14 = vmax.f32 %v1157_v13, 1e-24 }
 0x255   :  { %1290 = vrsqrt.f32 %v1158_v14 }
 0x25b   :  { %v1289_v11 = vpop.eup %1288 }
 0x25c   :  { %v1183_v39 = vmul.f32 %v1289_v11, %v1176_v43 }
 0x25e   :  { %v1185_v16 = vrot.slane %v1183_v39, 7 }
 0x25f   :  { %v1291_v45 = vpop.eup %1290 }
 0x260   :  { %v1160_v10 = vmul.f32 %v1291_v45, %v1152_v42 }
 0x262   :  { %v1188_v1 = vsel %vm1187_vm10, %v1160_v10, %v1185_v16 }
 0x263   :  { %1190 = vst.msk [vmem:[#allocation2] sm:$0x3] %vm1189_vm11, %v1188_v1 }
 0x264   :  { %1303 = shalt.err (!%p1300_p4)
}
 0x265   :  { %s1304_s13 = scalar_lea.hbm %s1786_s5, 32 }
 0x266   :  { %p1305_p5 = scmp.ne.s32.totalorder %s1786_s5, %s1304_s13  ;;  %p1308_p6 = scmp.lt.u32.totalorder %s1304_s13, %s1786_s5 }
 0x268   :  { %p1310_p7 = pnand %p1308_p6, %p1305_p5 }
 0x26a   :  { %1313 = shalt.err (!%p1310_p7)
}
 0x26b   :  { %1200 = dma.vmem_to_hbm [thread:$0]  %s1198_s4, 32, %s1786_s5, [#allocation3]  }
 0x26c   :  { %1314 = dma.done.wait [#allocation3], 32  }
 0x26d   :  { %1315 = vsyncadd [#allocation3], 4294967264 }
 0x26e   :  { %1204 = vsyncpa [#allocation3], 1 }

</bundles_post_ra>
